<compile_context>
chip_gen: v7x
topology: tpu7x:2x2x1
jax: 0.10.0
libtpu: 0.0.40
codegen_flags: <defaults>
</compile_context>

<pallas_src>
import functools

import jax
import jax.numpy as jnp
from jax import lax
from jax.experimental import pallas as pl
from jax.experimental.pallas import tpu as pltpu

_RGB_TO_Y = jnp.array([0.299, 0.587, 0.114], jnp.float32)  # piqa get_conv('RGB','Y')

# Below this pixel count, grid-step overhead + lane under-utilization dominate
# (perf review suggested 64*128) -> route through the plain-XLA path.
_MIN_PALLAS_PIXELS = 64 * 128
# VMEM limit clamp: leave headroom on v7x (64 MiB physical per TensorCore).
_VMEM_CLAMP_BYTES = 48 * 1024 * 1024


# ----------------------------------------------------------------------------
# Pallas kernel: roll+mask separable Prewitt gradients + GMS + unbiased std.
# ----------------------------------------------------------------------------
def _gmsd_kernel(x_ref, y_ref, o_ref, *, c, alpha):
    """Per-image GMSD for a (Bt, H, W) block of luminance images.

    The Prewitt gradient conv (F.conv2d, zero padding 1, piqa's default
    gradient_kernel(prewitt_kernel())) is computed separably with pltpu.roll
    shifts and border masks; only squared magnitudes are used, so the sign
    convention of the taps is irrelevant.
    """
    bt, H, W = x_ref.shape
    third = 1.0 / 3.0

    # Border masks (full (1, H, W) so the broadcasts are built once, not per use).
    col = lax.broadcasted_iota(jnp.int32, (1, H, W), 2)
    row = lax.broadcasted_iota(jnp.int32, (1, H, W), 1)
    has_l = col >= 1          # column j-1 exists
    has_r = col <= W - 2      # column j+1 exists
    has_u = row >= 1          # row    i-1 exists
    has_d = row <= H - 2      # row    i+1 exists

    # Shifted copies with a zero boundary.  pltpu.roll matches jnp.roll
    # (out[i] = in[(i - shift) % n]); shifts are kept non-negative.
    def left(z):   # z[., ., j-1], 0 at j == 0
        return jnp.where(has_l, pltpu.roll(z, 1, axis=2), 0.0)

    def right(z):  # z[., ., j+1], 0 at j == W-1
        return jnp.where(has_r, pltpu.roll(z, W - 1, axis=2), 0.0)

    def up(z):     # z[., i-1, .], 0 at i == 0
        return jnp.where(has_u, pltpu.roll(z, 1, axis=1), 0.0)

    def down(z):   # z[., i+1, .], 0 at i == H-1
        return jnp.where(has_d, pltpu.roll(z, H - 1, axis=1), 0.0)

    def grad_sq(z):
        # g0: horizontal [1,0,-1] diff, then vertical [1,1,1]/3 smooth.
        hdiff = left(z) - right(z)
        g0 = (up(hdiff) + hdiff + down(hdiff)) * third
        # g1: vertical [1,0,-1] diff, then horizontal [1,1,1]/3 smooth.
        vdiff = up(z) - down(z)
        g1 = (left(vdiff) + vdiff + right(vdiff)) * third
        return g0 * g0 + g1 * g1

    a = grad_sq(x_ref[...])             # GM(x)^2
    b = grad_sq(y_ref[...])             # GM(y)^2
    gm_xy = jnp.sqrt(a * b)             # GM(x) * GM(y)  (single sqrt)

    num = (2.0 - alpha) * gm_xy + c
    den = a + b + c
    if alpha > 0.0:
        den = den - alpha * gm_xy
    gms = num * pl.reciprocal(den, approx=True)      # EUP slot

    # Single-pass unbiased variance, shifted by 1 (GMS clusters near 1; the
    # variance is exactly shift-invariant, which avoids f32 cancellation).
    # NOTE(perf review): pushing these lane sums onto the idle MXU was
    # evaluated; at default f32 matmul precision the cancellation in
    # s2 - s1^2/n degrades, and two reduces are small next to the 16 rolls.
    d = gms - 1.0
    s1 = jnp.sum(jnp.sum(d, axis=2, keepdims=True), axis=1, keepdims=True)
    s2 = jnp.sum(jnp.sum(d * d, axis=2, keepdims=True), axis=1, keepdims=True)
    n = H * W
    var = (s2 - s1 * s1 * (1.0 / n)) * (1.0 / max(n - 1, 1))
    o_ref[...] = jnp.sqrt(jnp.maximum(var, 0.0))


# ----------------------------------------------------------------------------
# Wrapper: block-batch sizing, VMEM accounting, per-scale dispatch.
# ----------------------------------------------------------------------------
def _per_image_vmem_bytes(H, W):
    # 2 inputs x 2 pipeline buffers + ~16 live full-image f32 temporaries
    # (rolled copies, hdiff/vdiff, g0/g1, a/b, gm_xy, num/den, gms, d).
    # Deliberately generous so the limit never gates compilation.
    return 4 * H * W * (2 * 2 + 16)


def _pick_block_batch(N, H, W):
    budget = _VMEM_CLAMP_BYTES - (2 << 20)
    fit = max(1, budget // _per_image_vmem_bytes(H, W))
    # Keep >= 2 grid steps when possible so both v7x TensorCores get work.
    cap = int(fit) if N < 2 else int(min(fit, max(1, N // 2)))
    bt = 1
    for cand in range(1, cap + 1):      # largest divisor of N that fits
        if N % cand == 0:
            bt = cand
    return bt


def gmsd_pallas(x, y, c, alpha):
    """x, y: (N, H, W) luminance.  Returns (N,) GMSD (default Prewitt kernel)."""
    N, H, W = x.shape
    bt = _pick_block_batch(N, H, W)
    vmem_limit = int(min(max(bt * _per_image_vmem_bytes(H, W) + (2 << 20),
                             16 * 1024 * 1024), _VMEM_CLAMP_BYTES))
    out = pl.pallas_call(
        functools.partial(_gmsd_kernel, c=float(c), alpha=float(alpha)),
        out_shape=jax.ShapeDtypeStruct((N, 1, 1), jnp.float32),
        grid=(N // bt,),
        in_specs=[
            pl.BlockSpec((bt, H, W), lambda n: (n, 0, 0)),
            pl.BlockSpec((bt, H, W), lambda n: (n, 0, 0)),
        ],
        out_specs=pl.BlockSpec((bt, 1, 1), lambda n: (n, 0, 0)),
        compiler_params=pltpu.CompilerParams(
            dimension_semantics=("parallel",),
            vmem_limit_bytes=vmem_limit),
    )(x, y)
    return out[:, 0, 0]


def _gmsd_xla(x, y, c, alpha):
    """Plain-XLA per-scale GMSD (tiny / misaligned / oversized scales)."""
    def grad_sq(z):
        _, H, W = z.shape
        p = jnp.pad(z, ((0, 0), (1, 1), (1, 1)))
        s = (p[:, 0:H, :] + p[:, 1:H + 1, :] + p[:, 2:H + 2, :]) * (1.0 / 3.0)
        g0 = s[:, :, 0:W] - s[:, :, 2:W + 2]
        t = (p[:, :, 0:W] + p[:, :, 1:W + 1] + p[:, :, 2:W + 2]) * (1.0 / 3.0)
        g1 = t[:, 0:H, :] - t[:, 2:H + 2, :]
        return g0 * g0 + g1 * g1

    a = grad_sq(x)
    b = grad_sq(y)
    gm_xy = jnp.sqrt(a * b)
    num = (2.0 - alpha) * gm_xy + c
    den = a + b + c
    if alpha > 0.0:
        den = den - alpha * gm_xy
    gms = num / den
    n = gms.shape[1] * gms.shape[2]
    mean = jnp.mean(gms, axis=(1, 2), keepdims=True)
    var = jnp.sum((gms - mean) ** 2, axis=(1, 2)) / max(n - 1, 1)
    return jnp.sqrt(var)


def _gmsd_dispatch(x, y, c, alpha):
    _, H, W = x.shape
    lane_aligned = (W % 128 == 0) and (H % 8 == 0)   # lane-dense, (8,128) aligned
    big_enough = H * W >= _MIN_PALLAS_PIXELS
    fits_vmem = _per_image_vmem_bytes(H, W) + (2 << 20) <= _VMEM_CLAMP_BYTES
    if not (lane_aligned and big_enough and fits_vmem):
        # TODO(synk): oversized images should H-tile the Pallas kernel with a
        # 1-row halo ('arbitrary' axis) and accumulate s1/s2 partial sums
        # (needed for ~>768x768 on v7x's 64 MiB VMEM) instead of falling back.
        # TODO(synk): small / unaligned scales should repack batch (or rows)
        # into the 128-wide lane axis so the kernel stays lane-dense.
        return _gmsd_xla(x, y, c, alpha)
    return gmsd_pallas(x, y, c, alpha)


# ----------------------------------------------------------------------------
# JAX glue: RGB->Y, avg_pool2d(ceil_mode=True) downsampling, scale combination.
# ----------------------------------------------------------------------------
def _avg_pool2_ceil(z):
    """F.avg_pool2d(kernel_size=2, ceil_mode=True) on (N, H, W).

    With padding=0, PyTorch's divisor for the overhanging ceil-mode window is
    the number of valid elements, which is what the clipped counts give here.
    """
    N, H, W = z.shape
    Ho, Wo = (H + 1) // 2, (W + 1) // 2
    zp = jnp.pad(z, ((0, 0), (0, 2 * Ho - H), (0, 2 * Wo - W)))
    s = zp.reshape(N, Ho, 2, Wo, 2).sum(axis=(2, 4))
    rc = jnp.full((Ho,), 2.0, jnp.float32).at[Ho - 1].set(float(2 - (2 * Ho - H)))
    cc = jnp.full((Wo,), 2.0, jnp.float32).at[Wo - 1].set(float(2 - (2 * Wo - W)))
    return s / (rc[:, None] * cc[None, :])


def ms_gmsd_pallas(x_rgb, y_rgb, kernel, weights, value_range=1.0,
                   c=170.0 / 255.0 ** 2, alpha=0.5, reduction="mean"):
    # TODO(synk): fuse RGB->Y (and emission of the 2x-pooled luminance for the
    # next scale) into the scale-0 kernel to cut one full (N,H,W) HBM
    # write+read per input per scale (~1.3-2x end-to-end on v5e per review).
    # TODO(synk): piqa's _assert_type runtime checks (device/range) are skipped.
    # TODO(synk): the Pallas path hard-codes the default Prewitt gradient
    # kernel; `kernel` is only used by the pure-JAX reference below.
    x = jnp.einsum("c,nchw->nhw", _RGB_TO_Y, x_rgb.astype(jnp.float32))
    y = jnp.einsum("c,nchw->nhw", _RGB_TO_Y, y_rgb.astype(jnp.float32))
    c = c * value_range ** 2

    gmsds = []
    for i in range(weights.shape[0]):
        if i > 0:
            x = _avg_pool2_ceil(x)
            y = _avg_pool2_ceil(y)
        gmsds.append(_gmsd_dispatch(x, y, c, alpha))

    msg = jnp.stack(gmsds, axis=-1) ** 2
    l = jnp.sqrt(jnp.sum(msg * weights, axis=-1))
    if reduction == "mean":
        return jnp.mean(l)
    if reduction == "sum":
        return jnp.sum(l)
    return l


# ----------------------------------------------------------------------------
# Pure-JAX reference (correctness check only).
# ----------------------------------------------------------------------------
def _gmsd_ref(x, y, kernel, c, alpha):
    pad = kernel.shape[-1] // 2
    dn = ("NCHW", "OIHW", "NCHW")
    gx = lax.conv_general_dilated(x[:, None], kernel, (1, 1),
                                  [(pad, pad), (pad, pad)], dimension_numbers=dn)
    gy = lax.conv_general_dilated(y[:, None], kernel, (1, 1),
                                  [(pad, pad), (pad, pad)], dimension_numbers=dn)
    gm_x = jnp.sqrt(jnp.sum(gx ** 2, axis=1))
    gm_y = jnp.sqrt(jnp.sum(gy ** 2, axis=1))
    gm_xy = gm_x * gm_y
    num = (2.0 - alpha) * gm_xy + c
    den = gm_x ** 2 + gm_y ** 2 + c - alpha * gm_xy
    gms = num / den
    mean = jnp.mean(gms, axis=(1, 2), keepdims=True)
    var = jnp.sum((gms - mean) ** 2, axis=(1, 2)) / (gms.shape[1] * gms.shape[2] - 1)
    return jnp.sqrt(var)


def ms_gmsd_ref(x_rgb, y_rgb, kernel, weights, value_range=1.0,
                c=170.0 / 255.0 ** 2, alpha=0.5):
    x = jnp.einsum("c,nchw->nhw", _RGB_TO_Y, x_rgb.astype(jnp.float32))
    y = jnp.einsum("c,nchw->nhw", _RGB_TO_Y, y_rgb.astype(jnp.float32))
    c = c * value_range ** 2
    gmsds = []
    for i in range(weights.shape[0]):
        if i > 0:
            x = _avg_pool2_ceil(x)
            y = _avg_pool2_ceil(y)
        gmsds.append(_gmsd_ref(x, y, kernel, c, alpha))
    msg = jnp.stack(gmsds, axis=-1) ** 2
    return jnp.mean(jnp.sqrt(jnp.sum(msg * weights, axis=-1)))


if __name__ == "__main__":
    key = jax.random.PRNGKey(0)
    kx, ky = jax.random.split(key)
    # Small demo consistent with MS_GMSD's (N, 3, H, W) input; 128x128 keeps the
    # top scale lane-dense (W multiple of 128) so it exercises the Pallas path,
    # while the lower pyramid scales route through the XLA path per the review.
    N, C, H, W = 2, 3, 128, 128
    x = jax.random.uniform(kx, (N, C, H, W), jnp.float32)   # values in [0, 1]
    y = jax.random.uniform(ky, (N, C, H, W), jnp.float32)

    # Deterministic parameters (MS_GMSD.__init__ defaults):
    prewitt = jnp.array([[1.0, 0.0, -1.0]] * 3, jnp.float32) / 3.0
    kernel = jnp.stack([prewitt, prewitt.T])[:, None]        # (2, 1, 3, 3)
    weights = jnp.array([0.096, 0.596, 0.289, 0.019], jnp.float32)  # OFFICIAL_WEIGHTS

    fn = jax.jit(lambda a, b: ms_gmsd_pallas(a, b, kernel, weights))
    out = jax.block_until_ready(fn(x, y))

    ref = ms_gmsd_ref(x, y, kernel, weights)
    assert out.shape == ()
    # Tolerance accounts for the EUP approximate reciprocal in the GMS divide.
    assert jnp.allclose(out, ref, rtol=2e-3, atol=1e-5), (out, ref)
    print("KERNEL_OK")
</pallas_src>

<mosaic_0001>
module attributes {stable_mosaic.version = 11 : i64} {
  func.func @_gmsd_kernel(%arg0: i32, %arg1: memref<1x128x128xf32, #tpu.memory_space<vmem>>, %arg2: memref<1x128x128xf32, #tpu.memory_space<vmem>>, %arg3: memref<1x1x1xf32, #tpu.memory_space<vmem>>) attributes {dimension_semantics = [#tpu.dimension_semantics<parallel>], iteration_bounds = array<i64: 2>, scalar_prefetch = 0 : i64, scratch_operands = 0 : i64, tpu.core_type = #tpu.core_type<tc>, window_params = [{transform_indices = @transform_0, window_bounds = array<i64: 1, 128, 128>}, {transform_indices = @transform_1, window_bounds = array<i64: 1, 128, 128>}, {transform_indices = @transform_2, window_bounds = array<i64: 1, 1, 1>}]} {
    %0 = tpu.iota {dimensions = array<i32: 2>} : vector<1x128x128xi32>
    %1 = tpu.iota {dimensions = array<i32: 1>} : vector<1x128x128xi32>
    %c1_i32 = arith.constant 1 : i32
    %2 = vector.broadcast %c1_i32 : i32 to vector<1x128x128xi32>
    %3 = arith.cmpi sge, %0, %2 : vector<1x128x128xi32>
    %c126_i32 = arith.constant 126 : i32
    %4 = vector.broadcast %c126_i32 : i32 to vector<1x128x128xi32>
    %5 = arith.cmpi sle, %0, %4 : vector<1x128x128xi32>
    %c1_i32_0 = arith.constant 1 : i32
    %6 = vector.broadcast %c1_i32_0 : i32 to vector<1x128x128xi32>
    %7 = arith.cmpi sge, %1, %6 : vector<1x128x128xi32>
    %c126_i32_1 = arith.constant 126 : i32
    %8 = vector.broadcast %c126_i32_1 : i32 to vector<1x128x128xi32>
    %9 = arith.cmpi sle, %1, %8 : vector<1x128x128xi32>
    %c0 = arith.constant 0 : index
    %c0_2 = arith.constant 0 : index
    %c0_3 = arith.constant 0 : index
    %10 = vector.load %arg1[%c0, %c0_2, %c0_3] : memref<1x128x128xf32, #tpu.memory_space<vmem>>, vector<1x128x128xf32>
    %c1_i32_4 = arith.constant 1 : i32
    %11 = tpu.dynamic_rotate %10 by %c1_i32_4 dim 2 : vector<1x128x128xf32>, i32 -> vector<1x128x128xf32>
    %cst = arith.constant 0.000000e+00 : f32
    %12 = vector.broadcast %cst : f32 to vector<1x128x128xf32>
    %13 = arith.select %3, %11, %12 : vector<1x128x128xi1>, vector<1x128x128xf32>
    %c127_i32 = arith.constant 127 : i32
    %14 = tpu.dynamic_rotate %10 by %c127_i32 dim 2 : vector<1x128x128xf32>, i32 -> vector<1x128x128xf32>
    %cst_5 = arith.constant 0.000000e+00 : f32
    %15 = vector.broadcast %cst_5 : f32 to vector<1x128x128xf32>
    %16 = arith.select %5, %14, %15 : vector<1x128x128xi1>, vector<1x128x128xf32>
    %17 = arith.subf %13, %16 : vector<1x128x128xf32>
    %c1_i32_6 = arith.constant 1 : i32
    %18 = tpu.dynamic_rotate %17 by %c1_i32_6 dim 1 : vector<1x128x128xf32>, i32 -> vector<1x128x128xf32>
    %cst_7 = arith.constant 0.000000e+00 : f32
    %19 = vector.broadcast %cst_7 : f32 to vector<1x128x128xf32>
    %20 = arith.select %7, %18, %19 : vector<1x128x128xi1>, vector<1x128x128xf32>
    %21 = arith.addf %20, %17 : vector<1x128x128xf32>
    %c127_i32_8 = arith.constant 127 : i32
    %22 = tpu.dynamic_rotate %17 by %c127_i32_8 dim 1 : vector<1x128x128xf32>, i32 -> vector<1x128x128xf32>
    %cst_9 = arith.constant 0.000000e+00 : f32
    %23 = vector.broadcast %cst_9 : f32 to vector<1x128x128xf32>
    %24 = arith.select %9, %22, %23 : vector<1x128x128xi1>, vector<1x128x128xf32>
    %25 = arith.addf %21, %24 : vector<1x128x128xf32>
    %cst_10 = arith.constant 0.333333343 : f32
    %26 = vector.broadcast %cst_10 : f32 to vector<1x128x128xf32>
    %27 = arith.mulf %25, %26 : vector<1x128x128xf32>
    %c1_i32_11 = arith.constant 1 : i32
    %28 = tpu.dynamic_rotate %10 by %c1_i32_11 dim 1 : vector<1x128x128xf32>, i32 -> vector<1x128x128xf32>
    %cst_12 = arith.constant 0.000000e+00 : f32
    %29 = vector.broadcast %cst_12 : f32 to vector<1x128x128xf32>
    %30 = arith.select %7, %28, %29 : vector<1x128x128xi1>, vector<1x128x128xf32>
    %c127_i32_13 = arith.constant 127 : i32
    %31 = tpu.dynamic_rotate %10 by %c127_i32_13 dim 1 : vector<1x128x128xf32>, i32 -> vector<1x128x128xf32>
    %cst_14 = arith.constant 0.000000e+00 : f32
    %32 = vector.broadcast %cst_14 : f32 to vector<1x128x128xf32>
    %33 = arith.select %9, %31, %32 : vector<1x128x128xi1>, vector<1x128x128xf32>
    %34 = arith.subf %30, %33 : vector<1x128x128xf32>
    %c1_i32_15 = arith.constant 1 : i32
    %35 = tpu.dynamic_rotate %34 by %c1_i32_15 dim 2 : vector<1x128x128xf32>, i32 -> vector<1x128x128xf32>
    %cst_16 = arith.constant 0.000000e+00 : f32
    %36 = vector.broadcast %cst_16 : f32 to vector<1x128x128xf32>
    %37 = arith.select %3, %35, %36 : vector<1x128x128xi1>, vector<1x128x128xf32>
    %38 = arith.addf %37, %34 : vector<1x128x128xf32>
    %c127_i32_17 = arith.constant 127 : i32
    %39 = tpu.dynamic_rotate %34 by %c127_i32_17 dim 2 : vector<1x128x128xf32>, i32 -> vector<1x128x128xf32>
    %cst_18 = arith.constant 0.000000e+00 : f32
    %40 = vector.broadcast %cst_18 : f32 to vector<1x128x128xf32>
    %41 = arith.select %5, %39, %40 : vector<1x128x128xi1>, vector<1x128x128xf32>
    %42 = arith.addf %38, %41 : vector<1x128x128xf32>
    %cst_19 = arith.constant 0.333333343 : f32
    %43 = vector.broadcast %cst_19 : f32 to vector<1x128x128xf32>
    %44 = arith.mulf %42, %43 : vector<1x128x128xf32>
    %45 = arith.mulf %27, %27 : vector<1x128x128xf32>
    %46 = arith.mulf %44, %44 : vector<1x128x128xf32>
    %47 = arith.addf %45, %46 : vector<1x128x128xf32>
    %c0_20 = arith.constant 0 : index
    %c0_21 = arith.constant 0 : index
    %c0_22 = arith.constant 0 : index
    %48 = vector.load %arg2[%c0_20, %c0_21, %c0_22] : memref<1x128x128xf32, #tpu.memory_space<vmem>>, vector<1x128x128xf32>
    %c1_i32_23 = arith.constant 1 : i32
    %49 = tpu.dynamic_rotate %48 by %c1_i32_23 dim 2 : vector<1x128x128xf32>, i32 -> vector<1x128x128xf32>
    %cst_24 = arith.constant 0.000000e+00 : f32
    %50 = vector.broadcast %cst_24 : f32 to vector<1x128x128xf32>
    %51 = arith.select %3, %49, %50 : vector<1x128x128xi1>, vector<1x128x128xf32>
    %c127_i32_25 = arith.constant 127 : i32
    %52 = tpu.dynamic_rotate %48 by %c127_i32_25 dim 2 : vector<1x128x128xf32>, i32 -> vector<1x128x128xf32>
    %cst_26 = arith.constant 0.000000e+00 : f32
    %53 = vector.broadcast %cst_26 : f32 to vector<1x128x128xf32>
    %54 = arith.select %5, %52, %53 : vector<1x128x128xi1>, vector<1x128x128xf32>
    %55 = arith.subf %51, %54 : vector<1x128x128xf32>
    %c1_i32_27 = arith.constant 1 : i32
    %56 = tpu.dynamic_rotate %55 by %c1_i32_27 dim 1 : vector<1x128x128xf32>, i32 -> vector<1x128x128xf32>
    %cst_28 = arith.constant 0.000000e+00 : f32
    %57 = vector.broadcast %cst_28 : f32 to vector<1x128x128xf32>
    %58 = arith.select %7, %56, %57 : vector<1x128x128xi1>, vector<1x128x128xf32>
    %59 = arith.addf %58, %55 : vector<1x128x128xf32>
    %c127_i32_29 = arith.constant 127 : i32
    %60 = tpu.dynamic_rotate %55 by %c127_i32_29 dim 1 : vector<1x128x128xf32>, i32 -> vector<1x128x128xf32>
    %cst_30 = arith.constant 0.000000e+00 : f32
    %61 = vector.broadcast %cst_30 : f32 to vector<1x128x128xf32>
    %62 = arith.select %9, %60, %61 : vector<1x128x128xi1>, vector<1x128x128xf32>
    %63 = arith.addf %59, %62 : vector<1x128x128xf32>
    %cst_31 = arith.constant 0.333333343 : f32
    %64 = vector.broadcast %cst_31 : f32 to vector<1x128x128xf32>
    %65 = arith.mulf %63, %64 : vector<1x128x128xf32>
    %c1_i32_32 = arith.constant 1 : i32
    %66 = tpu.dynamic_rotate %48 by %c1_i32_32 dim 1 : vector<1x128x128xf32>, i32 -> vector<1x128x128xf32>
    %cst_33 = arith.constant 0.000000e+00 : f32
    %67 = vector.broadcast %cst_33 : f32 to vector<1x128x128xf32>
    %68 = arith.select %7, %66, %67 : vector<1x128x128xi1>, vector<1x128x128xf32>
    %c127_i32_34 = arith.constant 127 : i32
    %69 = tpu.dynamic_rotate %48 by %c127_i32_34 dim 1 : vector<1x128x128xf32>, i32 -> vector<1x128x128xf32>
    %cst_35 = arith.constant 0.000000e+00 : f32
    %70 = vector.broadcast %cst_35 : f32 to vector<1x128x128xf32>
    %71 = arith.select %9, %69, %70 : vector<1x128x128xi1>, vector<1x128x128xf32>
    %72 = arith.subf %68, %71 : vector<1x128x128xf32>
    %c1_i32_36 = arith.constant 1 : i32
    %73 = tpu.dynamic_rotate %72 by %c1_i32_36 dim 2 : vector<1x128x128xf32>, i32 -> vector<1x128x128xf32>
    %cst_37 = arith.constant 0.000000e+00 : f32
    %74 = vector.broadcast %cst_37 : f32 to vector<1x128x128xf32>
    %75 = arith.select %3, %73, %74 : vector<1x128x128xi1>, vector<1x128x128xf32>
    %76 = arith.addf %75, %72 : vector<1x128x128xf32>
    %c127_i32_38 = arith.constant 127 : i32
    %77 = tpu.dynamic_rotate %72 by %c127_i32_38 dim 2 : vector<1x128x128xf32>, i32 -> vector<1x128x128xf32>
    %cst_39 = arith.constant 0.000000e+00 : f32
    %78 = vector.broadcast %cst_39 : f32 to vector<1x128x128xf32>
    %79 = arith.select %5, %77, %78 : vector<1x128x128xi1>, vector<1x128x128xf32>
    %80 = arith.addf %76, %79 : vector<1x128x128xf32>
    %cst_40 = arith.constant 0.333333343 : f32
    %81 = vector.broadcast %cst_40 : f32 to vector<1x128x128xf32>
    %82 = arith.mulf %80, %81 : vector<1x128x128xf32>
    %83 = arith.mulf %65, %65 : vector<1x128x128xf32>
    %84 = arith.mulf %82, %82 : vector<1x128x128xf32>
    %85 = arith.addf %83, %84 : vector<1x128x128xf32>
    %86 = arith.mulf %47, %85 : vector<1x128x128xf32>
    %87 = math.sqrt %86 : vector<1x128x128xf32>
    %cst_41 = arith.constant 1.500000e+00 : f32
    %88 = vector.broadcast %cst_41 : f32 to vector<1x128x128xf32>
    %89 = arith.mulf %88, %87 : vector<1x128x128xf32>
    %cst_42 = arith.constant 0.00261437916 : f32
    %90 = vector.broadcast %cst_42 : f32 to vector<1x128x128xf32>
    %91 = arith.addf %89, %90 : vector<1x128x128xf32>
    %92 = arith.addf %47, %85 : vector<1x128x128xf32>
    %cst_43 = arith.constant 0.00261437916 : f32
    %93 = vector.broadcast %cst_43 : f32 to vector<1x128x128xf32>
    %94 = arith.addf %92, %93 : vector<1x128x128xf32>
    %cst_44 = arith.constant 5.000000e-01 : f32
    %95 = vector.broadcast %cst_44 : f32 to vector<1x128x128xf32>
    %96 = arith.mulf %95, %87 : vector<1x128x128xf32>
    %97 = arith.subf %94, %96 : vector<1x128x128xf32>
    %98 = tpu.reciprocal %97 {approx = true} : vector<1x128x128xf32> -> vector<1x128x128xf32>
    %99 = arith.mulf %91, %98 : vector<1x128x128xf32>
    %cst_45 = arith.constant 1.000000e+00 : f32
    %100 = vector.broadcast %cst_45 : f32 to vector<1x128x128xf32>
    %101 = arith.subf %99, %100 : vector<1x128x128xf32>
    %cst_46 = arith.constant dense<0.000000e+00> : vector<1x128xf32>
    %102 = vector.multi_reduction <add>, %101, %cst_46 [2] : vector<1x128x128xf32> to vector<1x128xf32>
    %103 = vector.shape_cast %102 : vector<1x128xf32> to vector<1x128x1xf32>
    %cst_47 = arith.constant dense<0.000000e+00> : vector<1x1xf32>
    %104 = vector.multi_reduction <add>, %103, %cst_47 [1] : vector<1x128x1xf32> to vector<1x1xf32>
    %105 = vector.shape_cast %104 : vector<1x1xf32> to vector<1x1x1xf32>
    %106 = arith.mulf %101, %101 : vector<1x128x128xf32>
    %cst_48 = arith.constant dense<0.000000e+00> : vector<1x128xf32>
    %107 = vector.multi_reduction <add>, %106, %cst_48 [2] : vector<1x128x128xf32> to vector<1x128xf32>
    %108 = vector.shape_cast %107 : vector<1x128xf32> to vector<1x128x1xf32>
    %cst_49 = arith.constant dense<0.000000e+00> : vector<1x1xf32>
    %109 = vector.multi_reduction <add>, %108, %cst_49 [1] : vector<1x128x1xf32> to vector<1x1xf32>
    %110 = vector.shape_cast %109 : vector<1x1xf32> to vector<1x1x1xf32>
    %111 = arith.mulf %105, %105 : vector<1x1x1xf32>
    %cst_50 = arith.constant 6.10351563E-5 : f32
    %112 = vector.broadcast %cst_50 : f32 to vector<1x1x1xf32>
    %113 = arith.mulf %111, %112 : vector<1x1x1xf32>
    %114 = arith.subf %110, %113 : vector<1x1x1xf32>
    %cst_51 = arith.constant 6.10388815E-5 : f32
    %115 = vector.broadcast %cst_51 : f32 to vector<1x1x1xf32>
    %116 = arith.mulf %114, %115 : vector<1x1x1xf32>
    %cst_52 = arith.constant 0.000000e+00 : f32
    %117 = vector.broadcast %cst_52 : f32 to vector<1x1x1xf32>
    %118 = arith.maximumf %116, %117 : vector<1x1x1xf32>
    %119 = math.sqrt %118 : vector<1x1x1xf32>
    %c0_53 = arith.constant 0 : index
    %c0_54 = arith.constant 0 : index
    %c0_55 = arith.constant 0 : index
    %120 = vector.load %arg3[%c0_53, %c0_54, %c0_55] : memref<1x1x1xf32, #tpu.memory_space<vmem>>, vector<1x1x1xf32>
    tpu.vector_store %arg3[%c0_53, %c0_54, %c0_55], %119 {strides = array<i32>} : memref<1x1x1xf32, #tpu.memory_space<vmem>>, vector<1x1x1xf32>,
    return
  }
  func.func @transform_0(%arg0: i32) -> (i32, i32, i32) {
    %c0_i32 = arith.constant 0 : i32
    %c0_i32_0 = arith.constant 0 : i32
    %c0_i32_1 = arith.constant 0 : i32
    return %arg0, %c0_i32, %c0_i32_0 : i32, i32, i32
  }
  func.func @transform_1(%arg0: i32) -> (i32, i32, i32) {
    %c0_i32 = arith.constant 0 : i32
    %c0_i32_0 = arith.constant 0 : i32
    %c0_i32_1 = arith.constant 0 : i32
    return %arg0, %c0_i32, %c0_i32_0 : i32, i32, i32
  }
  func.func @transform_2(%arg0: i32) -> (i32, i32, i32) {
    %c0_i32 = arith.constant 0 : i32
    %c0_i32_0 = arith.constant 0 : i32
    %c0_i32_1 = arith.constant 0 : i32
    return %arg0, %c0_i32, %c0_i32_0 : i32, i32, i32
  }
}

</mosaic_0001>

<bundles_post_ra>
// kernel: _lambda_.1
= control target key start
LH: loop header
LB: loop body
LE: loop exit
PB: predicated region body
PF: predicated region fallthrough
CT: control target
= control target key end

     0   :  { %s1964_s9 = smov 0   ;;  %s3734_s0 = inlined_call_operand.vmem [shape: f32[2,128,128], index: 0, kind: input, shape index: {}]   ;;  %s3735_s1 = inlined_call_operand.vmem [shape: f32[2,128,128], index: 1, kind: input, shape index: {}]   ;;  %s3736_s2 = inlined_call_operand.vmem [shape: f32[2,1,1], index: 2, kind: output, shape index: {}]  }
   0x1 LB: > { %s1834_s10 = sadd.s32 4294967295, %s1945_s9   ;;  %p1838_p0 = scmp.ge.s32.totalorder %s1945_s9, 1  ;;  %s1945_s9 = sphi %s1964_s9, %s12_s9  }
   0x2   : > { %p122_p1 = scmp.lt.s32.totalorder %s1945_s9, 3 }
   0x4   : > { %p123_p2 = pnand %p1838_p0, %p122_p1 }
   0x6   : > { %126 = sbr.rel (%p123_p2) target bundleno = 617 (0x269), region = 28 }
   0xd   : > { %p147_p3 = scmp.lt.s32.totalorder %s1834_s10, 1  ;;  %s1947_s15 = smov 1   ;;  %v160_v16 = vlaneseq }
   0xe   : > { %s1948_s16 = smov 127  }
   0xf   : > { %s3887_s10 = smov (!%p147_p3, %s1834_s10), 1  ;;  %v2079_v17 = vshrl.u32 %v160_v16, 7 }
  0x10   : > { %s1861_s11 = sshll.u32 %s3887_s10, 7  ;;  %s159_s22 = scalar_lea.vmem %s3736_s2, %s3887_s10 }
  0x11   : > { %s1980_s14 = scalar_lea.vmem %s3734_s0, %s1861_s11  ;;  %vm357_vm0 = vcmp.lt.s32.totalorder %v2079_v17, 1  ;;  %vm181_vm1 = vcmp.ge.s32.totalorder %v2079_v17, 1  ;;  %vm422_vm2 = vcmp.lt.s32.totalorder %v2079_v17, 7  ;;  %s2219_s19 = scalar_lea.vmem %s3735_s1, %s1861_s11 }
  0x12   : > { %v1983_v0 = vld [vmem:[%s1980_s14 + $0x10] sm:$0xff]  ;;  %v1986_v1 = vld [vmem:[%s1980_s14] sm:$0xff]  ;;  %v1993_v2 = vld [vmem:[%s1980_s14 + $0x18] sm:$0xff] }
  0x13   : > { %233 = vrot.lane.b32.xlu1 %v1983_v0, %s1947_s15  ;;  %229 = vrot.lane.b32.xlu0 %v1986_v1, %s1947_s15  ;;  %v1996_v3 = vld [vmem:[%s1980_s14 + $0x8] sm:$0xff]  ;;  %v2006_v5 = vld [vmem:[%s1980_s14 + $0x20] sm:$0xff]  ;;  %v487_v18 = vrot.slane %v1986_v1, 7  ;;  %v537_v20 = vrot.slane %v1983_v0, 1  ;;  %v535_v21 = vrot.slane %v1986_v1, 1  ;;  %v489_v25 = vrot.slane %v1983_v0, 7 }
  0x14   : > { %v2003_v4 = vld [vmem:[%s1980_s14 + $0x28] sm:$0xff]  ;;  %v2013_v6 = vld [vmem:[%s1980_s14 + $0x38] sm:$0xff]  ;;  %v2016_v7 = vld [vmem:[%s1980_s14 + $0x30] sm:$0xff]  ;;  %v488_v22 = vrot.slane %v1996_v3, 7  ;;  %v536_v23 = vrot.slane %v1996_v3, 1  ;;  %v490_v26 = vrot.slane %v1993_v2, 7 }
  0x15   : > { %v2023_v8 = vld [vmem:[%s1980_s14 + $0x48] sm:$0xff]  ;;  %v2026_v9 = vld [vmem:[%s1980_s14 + $0x40] sm:$0xff]  ;;  %v2033_v10 = vld [vmem:[%s1980_s14 + $0x58] sm:$0xff]  ;;  %v538_v27 = vrot.slane %v1993_v2, 1  ;;  %v539_v28 = vrot.slane %v2006_v5, 1  ;;  %v492_v33 = vrot.slane %v2003_v4, 7 }
  0x16   : > { %v2036_v11 = vld [vmem:[%s1980_s14 + $0x50] sm:$0xff]  ;;  %v2043_v12 = vld [vmem:[%s1980_s14 + $0x68] sm:$0xff]  ;;  %v2046_v13 = vld [vmem:[%s1980_s14 + $0x60] sm:$0xff]  ;;  %v565_v30 = vsel %vm422_vm2, %v535_v21, %v536_v23  ;;  %v517_v31 = vsel %vm357_vm0, %v487_v18, %v488_v22  ;;  %v564_v32 = vsel %vm422_vm2, %v536_v23, %v537_v20  ;;  %v540_v34 = vrot.slane %v2003_v4, 1 }
  0x17   : > { %235 = vrot.lane.b32.xlu1 %v1993_v2, %s1947_s15  ;;  %231 = vrot.lane.b32.xlu0 %v1996_v3, %s1947_s15  ;;  %v2053_v14 = vld [vmem:[%s1980_s14 + $0x78] sm:$0xff]  ;;  %v2056_v15 = vld [vmem:[%s1980_s14 + $0x70] sm:$0xff]  ;;  %v491_v35 = vrot.slane %v2006_v5, 7  ;;  %v541_v36 = vrot.slane %v2016_v7, 1  ;;  %v2130_v38 = vsub.f32 %v517_v31, %v564_v32  ;;  %v516_v39 = vsel %vm357_vm0, %v488_v22, %v489_v25 }
  0x18   : > { %v502_v19 = vrot.slane %v2053_v14, 7  ;;  %v563_v40 = vsel %vm422_vm2, %v537_v20, %v538_v27  ;;  %v515_v41 = vsel %vm357_vm0, %v489_v25, %v490_v26  ;;  %v562_v42 = vsel %vm422_vm2, %v538_v27, %v539_v28  ;;  %v2235_v27 = vld [vmem:[%s2219_s19 + $0x78] sm:$0xff] }
  0x19   : > { %3788 = vst [vmem:[#allocation3_spill] sm:$0xff] %v2130_v38  ;;  %v546_v43 = vrot.slane %v2033_v10, 1  ;;  %v497_v44 = vrot.slane %v2036_v11, 7  ;;  %v494_v45 = vrot.slane %v2013_v6, 7  ;;  %v542_v46 = vrot.slane %v2013_v6, 1 }
  0x1a   : > { %v518_v24 = vsel %vm357_vm0, %v502_v19, %v487_v18  ;;  %v493_v47 = vrot.slane %v2016_v7, 7  ;;  %v496_v48 = vrot.slane %v2023_v8, 7  ;;  %v543_v49 = vrot.slane %v2026_v9, 1 }
  0x1b   : > { %239 = vrot.lane.b32.xlu1 %v2003_v4, %s1947_s15  ;;  %237 = vrot.lane.b32.xlu0 %v2006_v5, %s1947_s15  ;;  %v519_v29 = vsel %vm181_vm1, %v518_v24, 0.0  ;;  %v545_v50 = vrot.slane %v2036_v11, 1  ;;  %v2152_v51 = vsub.f32 %v516_v39, %v563_v40  ;;  %v2154_v52 = vsub.f32 %v515_v41, %v562_v42 }
  0x1c   : > { %v2128_v37 = vsub.f32 %v519_v29, %v565_v30  ;;  %v514_v53 = vsel %vm357_vm0, %v490_v26, %v491_v35  ;;  %v561_v54 = vsel %vm422_vm2, %v539_v28, %v540_v34  ;;  %v513_v55 = vsel %vm357_vm0, %v491_v35, %v492_v33  ;;  %v2232_v26 = vld [vmem:[%s2219_s19] sm:$0xff]  ;;  %v792_v30 = vld [vmem:[%s2219_s19 + $0x8] sm:$0xff] }
  0x1d   : > { %3789 = vst [vmem:[#allocation4_spill] sm:$0xff] %v2152_v51  ;;  %3790 = vst [vmem:[#allocation5_spill] sm:$0xff] %v2154_v52  ;;  %v560_v56 = vsel %vm422_vm2, %v540_v34, %v541_v36  ;;  %v508_v57 = vsel %vm357_vm0, %v496_v48, %v497_v44  ;;  %v555_v58 = vsel %vm422_vm2, %v545_v50, %v546_v43  ;;  %v544_v60 = vrot.slane %v2023_v8, 1 }
  0x1e   : > { %3787 = vst [vmem:[#allocation2_spill] sm:$0xff] %v2128_v37  ;;  %v2168_v59 = vsub.f32 %v508_v57, %v555_v58  ;;  %v495_v61 = vrot.slane %v2026_v9, 7  ;;  %v2176_v62 = vsub.f32 %v514_v53, %v561_v54  ;;  %v2178_v63 = vsub.f32 %v513_v55, %v560_v56 }
  0x1f   : > { %243 = vrot.lane.b32.xlu1 %v2013_v6, %s1947_s15  ;;  %241 = vrot.lane.b32.xlu0 %v2016_v7, %s1947_s15  ;;  %v498_v18 = vrot.slane %v2033_v10, 7  ;;  %v547_v20 = vrot.slane %v2046_v13, 1  ;;  %v548_v28 = vrot.slane %v2043_v12, 1  ;;  %v499_v29 = vrot.slane %v2046_v13, 7 }
  0x20   : > { %3791 = vst [vmem:[#allocation6_spill] sm:$0xff] %v2176_v62  ;;  %3792 = vst [vmem:[#allocation7_spill] sm:$0xff] %v2178_v63  ;;  %v1063_v31 = vrot.slane %v2232_v26, 7  ;;  %v3737_v32 = vrot.slane %v2235_v27, 7  ;;  %v1064_v39 = vrot.slane %v792_v30, 7  ;;  %v1112_v40 = vrot.slane %v792_v30, 1 }
  0x21   : > { %v554_v24 = vsel %vm422_vm2, %v546_v43, %v547_v20  ;;  %v553_v34 = vsel %vm422_vm2, %v547_v20, %v548_v28  ;;  %v500_v43 = vrot.slane %v2043_v12, 7  ;;  %v550_v56 = vrot.slane %v2053_v14, 1 }
  0x22   : > { %v1094_v42 = vsel %vm357_vm0, %v3737_v32, %v1063_v31  ;;  %v501_v57 = vrot.slane %v2056_v15, 7 }
  0x23   : > { %247 = vrot.lane.b32.xlu1 %v2023_v8, %s1947_s15  ;;  %245 = vrot.lane.b32.xlu0 %v2026_v9, %s1947_s15 }
  0x24   : > { %v503_v20 = vsel %vm357_vm0, %v501_v57, %v502_v19 }
  0x27   : > { %251 = vrot.lane.b32.xlu1 %v2033_v10, %s1947_s15  ;;  %249 = vrot.lane.b32.xlu0 %v2036_v11, %s1947_s15 }
  0x2b   : > { %255 = vrot.lane.b32.xlu1 %v2043_v12, %s1947_s15  ;;  %253 = vrot.lane.b32.xlu0 %v2046_v13, %s1947_s15 }
  0x2f   : > { %259 = vrot.lane.b32.xlu1 %v2053_v14, %s1947_s15  ;;  %257 = vrot.lane.b32.xlu0 %v2056_v15, %s1947_s15 }
  0x33   : > { %279 = vrot.lane.b32.xlu1 %v1996_v3, %s1948_s16  ;;  %277 = vrot.lane.b32.xlu0 %v1986_v1, %s1948_s16  ;;  %v511_v3 = vsel %vm357_vm0, %v493_v47, %v494_v45 }
  0x37   : > { %283 = vrot.lane.b32.xlu1 %v1993_v2, %s1948_s16  ;;  %281 = vrot.lane.b32.xlu0 %v1983_v0, %s1948_s16  ;;  %v512_v0 = vsel %vm357_vm0, %v492_v33, %v493_v47  ;;  %v559_v2 = vsel %vm422_vm2, %v541_v36, %v542_v46  ;;  %v506_v33 = vsel %vm357_vm0, %v498_v18, %v499_v29  ;;  %v3738_v36 = vrot.slane %v2232_v26, 1 }
  0x38   : > { %v2254_v35 = vsub.f32 %v506_v33, %v553_v34 }
  0x39   : > { %v1141_v47 = vsel %vm422_vm2, %v3738_v36, %v1112_v40 }
  0x3a   : > { %3796 = vst [vmem:[#allocation11_spill] sm:$0xff] %v2254_v35 }
  0x3b   : > { %287 = vrot.lane.b32.xlu1 %v2003_v4, %s1948_s16  ;;  %285 = vrot.lane.b32.xlu0 %v2006_v5, %s1948_s16  ;;  %v558_v4 = vsel %vm422_vm2, %v542_v46, %v543_v49  ;;  %v2192_v5 = vsub.f32 %v512_v0, %v559_v2  ;;  %v1095_v46 = vsel %vm181_vm1, %v1094_v42, 0.0  ;;  %v504_v0 = vsel %vm357_vm0, %v500_v43, %v501_v57  ;;  %v797_v42 = vld [vmem:[%s2219_s19 + $0x30] sm:$0xff] }
  0x3c   : > { %v2285_v53 = vsub.f32 %v1095_v46, %v1141_v47 }
  0x3d   : > { %3793 = vst [vmem:[#allocation8_spill] sm:$0xff] %v2192_v5 }
  0x3e   : > { %3797 = vst [vmem:[#allocation12_spill] sm:$0xff] %v2285_v53 }
  0x3f   : > { %291 = vrot.lane.b32.xlu1 %v2013_v6, %s1948_s16  ;;  %289 = vrot.lane.b32.xlu0 %v2016_v7, %s1948_s16  ;;  %v2194_v6 = vsub.f32 %v511_v3, %v558_v4  ;;  %v510_v7 = vsel %vm357_vm0, %v494_v45, %v495_v61  ;;  %v794_v45 = vld [vmem:[%s2219_s19 + $0x18] sm:$0xff] }
  0x40   : > { %v1066_v1 = vrot.slane %v794_v45, 7 }
  0x43   : > { %295 = vrot.lane.b32.xlu1 %v2023_v8, %s1948_s16  ;;  %293 = vrot.lane.b32.xlu0 %v2026_v9, %s1948_s16  ;;  %v557_v8 = vsel %vm422_vm2, %v543_v49, %v544_v60  ;;  %v509_v9 = vsel %vm357_vm0, %v495_v61, %v496_v48  ;;  %v1093_v48 = vsel %vm357_vm0, %v1063_v31, %v1064_v39  ;;  %v795_v61 = vld [vmem:[%s2219_s19 + $0x20] sm:$0xff] }
  0x44   : > { %v2210_v22 = vsub.f32 %v510_v7, %v557_v8  ;;  %v505_v49 = vsel %vm357_vm0, %v499_v29, %v500_v43  ;;  %v2311_v7 = vadd.s32 120, %v2079_v17  ;;  %v796_v29 = vld [vmem:[%s2219_s19 + $0x28] sm:$0xff] }
  0x46   : > { %3801 = vst [vmem:[#allocation16_spill] sm:$0xff] %v2311_v7  ;;  %vm212_vm3 = vcmp.le.s32.totalorder %v2311_v7, 126 }
  0x47   : > { %299 = vrot.lane.b32.xlu1 %v2033_v10, %s1948_s16  ;;  %297 = vrot.lane.b32.xlu0 %v2036_v11, %s1948_s16  ;;  %v556_v11 = vsel %vm422_vm2, %v544_v60, %v545_v50  ;;  %v507_v10 = vsel %vm357_vm0, %v497_v44, %v498_v18  ;;  %v549_v44 = vrot.slane %v2056_v15, 1  ;;  %v1114_v60 = vrot.slane %v794_v45, 1 }
  0x48   : > { %v2212_v23 = vsub.f32 %v509_v9, %v556_v11  ;;  %v2225_v25 = vsub.f32 %v507_v10, %v554_v24  ;;  %v566_v18 = vsel %vm422_vm2, %v550_v56, %v535_v21 }
  0x49   : > { %v552_v50 = vsel %vm422_vm2, %v548_v28, %v549_v44  ;;  %v551_v2 = vsel %vm422_vm2, %v549_v44, %v550_v56  ;;  %v582_v10 = vsel %vm212_vm3, %v566_v18, 0.0  ;;  %v1115_v28 = vrot.slane %v795_v61, 1  ;;  %v798_v56 = vld [vmem:[%s2219_s19 + $0x38] sm:$0xff] }
  0x4a   : > { %3794 = vst [vmem:[#allocation9_spill] sm:$0xff] %v2212_v23  ;;  %3795 = vst [vmem:[#allocation10_spill] sm:$0xff] %v2225_v25  ;;  %v2289_v55 = vsub.f32 %v505_v49, %v552_v50  ;;  %v2338_v24 = vsub.f32 %v503_v20, %v582_v10  ;;  %v1068_v49 = vrot.slane %v796_v29, 7  ;;  %v1117_v50 = vrot.slane %v797_v42, 1 }
  0x4b   : > { %303 = vrot.lane.b32.xlu1 %v2043_v12, %s1948_s16  ;;  %301 = vrot.lane.b32.xlu0 %v2046_v13, %s1948_s16  ;;  %v793_v13 = vld [vmem:[%s2219_s19 + $0x10] sm:$0xff]  ;;  %v1118_v18 = vrot.slane %v798_v56, 1 }
  0x4c   : > { %v1113_v41 = vrot.slane %v793_v13, 1  ;;  %3799 = vst [vmem:[#allocation14_spill] sm:$0xff] %v2289_v55  ;;  %v1065_v58 = vrot.slane %v793_v13, 7  ;;  %3803 = vst [vmem:[#allocation18_spill] sm:$0xff] %v2338_v24 }
  0x4e   : > { %v1140_v12 = vsel %vm422_vm2, %v1112_v40, %v1113_v41  ;;  %v1092_v3 = vsel %vm357_vm0, %v1064_v39, %v1065_v58  ;;  %v1139_v4 = vsel %vm422_vm2, %v1113_v41, %v1114_v60  ;;  %v1091_v19 = vsel %vm357_vm0, %v1065_v58, %v1066_v1 }
  0x4f   : > { %307 = vrot.lane.b32.xlu1 %v2053_v14, %s1948_s16  ;;  %305 = vrot.lane.b32.xlu0 %v2056_v15, %s1948_s16  ;;  %v2287_v54 = vsub.f32 %v1093_v48, %v1140_v12  ;;  %v2304_v15 = vsub.f32 %v504_v0, %v551_v2  ;;  %v2317_v8 = vsub.f32 %v1092_v3, %v1139_v4  ;;  %v1116_v39 = vrot.slane %v796_v29, 1 }
  0x50   : > { %v1069_v4 = vrot.slane %v797_v42, 7 }
  0x51   : > { %3798 = vst [vmem:[#allocation13_spill] sm:$0xff] %v2287_v54  ;;  %3800 = vst [vmem:[#allocation15_spill] sm:$0xff] %v2304_v15  ;;  %v1137_v44 = vsel %vm422_vm2, %v1115_v28, %v1116_v39 }
  0x52   : > { %3802 = vst [vmem:[#allocation17_spill] sm:$0xff] %v2317_v8 }
  0x53   : > { %599 = vrot.lane.b32.xlu0 %v2128_v37, %s1947_s15  ;;  %601 = vrot.lane.b32.xlu1 %v2130_v38, %s1947_s15 }
  0x57   : > { %603 = vrot.lane.b32.xlu0 %v2152_v51, %s1947_s15  ;;  %605 = vrot.lane.b32.xlu1 %v2154_v52, %s1947_s15 }
  0x5b   : > { %607 = vrot.lane.b32.xlu0 %v2176_v62, %s1947_s15  ;;  %609 = vrot.lane.b32.xlu1 %v2178_v63, %s1947_s15 }
  0x5f   : > { %611 = vrot.lane.b32.xlu0 %v2192_v5, %s1947_s15  ;;  %613 = vrot.lane.b32.xlu1 %v2194_v6, %s1947_s15 }
  0x63   : > { %615 = vrot.lane.b32.xlu0 %v2210_v22, %s1947_s15  ;;  %617 = vrot.lane.b32.xlu1 %v2212_v23, %s1947_s15 }
  0x67   : > { %807 = vrot.lane.b32.xlu0 %v2232_v26, %s1947_s15  ;;  %837 = vrot.lane.b32.xlu1 %v2235_v27, %s1947_s15 }
  0x6b   : > { %855 = vrot.lane.b32.xlu0 %v2232_v26, %s1948_s16  ;;  %885 = vrot.lane.b32.xlu1 %v2235_v27, %s1948_s16 }
  0x6f   : > { %809 = vrot.lane.b32.xlu0 %v792_v30, %s1947_s15  ;;  %857 = vrot.lane.b32.xlu1 %v792_v30, %s1948_s16  ;;  %v1138_v30 = vsel %vm422_vm2, %v1114_v60, %v1115_v28  ;;  %v1088_v28 = vsel %vm357_vm0, %v1068_v49, %v1069_v4 }
  0x70   : > { %v2359_v34 = vsub.f32 %v1091_v19, %v1138_v30 }
  0x72   : > { %3804 = vst [vmem:[#allocation19_spill] sm:$0xff] %v2359_v34 }
  0x73   : > { %811 = vrot.lane.b32.xlu0 %v793_v13, %s1947_s15  ;;  %859 = vrot.lane.b32.xlu1 %v793_v13, %s1948_s16  ;;  %v1067_v13 = vrot.slane %v795_v61, 7 }
  0x75   : > { %v1090_v43 = vsel %vm357_vm0, %v1066_v1, %v1067_v13  ;;  %v1089_v60 = vsel %vm357_vm0, %v1067_v13, %v1068_v49  ;;  %v799_v1 = vld [vmem:[%s2219_s19 + $0x40] sm:$0xff]  ;;  %v800_v49 = vld [vmem:[%s2219_s19 + $0x48] sm:$0xff] }
  0x76   : > { %v2380_v47 = vsub.f32 %v1090_v43, %v1137_v44  ;;  %v1070_v43 = vrot.slane %v798_v56, 7  ;;  %v1119_v44 = vrot.slane %v799_v1, 1 }
  0x77   : > { %813 = vrot.lane.b32.xlu0 %v794_v45, %s1947_s15  ;;  %861 = vrot.lane.b32.xlu1 %v794_v45, %s1948_s16 }
  0x78   : > { %3805 = vst [vmem:[#allocation20_spill] sm:$0xff] %v2380_v47 }
  0x7b   : > { %1175 = vrot.lane.b32.xlu0 %v2285_v53, %s1947_s15  ;;  %1177 = vrot.lane.b32.xlu1 %v2287_v54, %s1947_s15 }
  0x7f   : > { %815 = vrot.lane.b32.xlu0 %v795_v61, %s1947_s15  ;;  %863 = vrot.lane.b32.xlu1 %v795_v61, %s1948_s16  ;;  %v1136_v61 = vsel %vm422_vm2, %v1116_v39, %v1117_v50 }
  0x80   : > { %v2409_v3 = vsub.f32 %v1089_v60, %v1136_v61  ;;  %v1071_v61 = vrot.slane %v799_v1, 7 }
  0x82   : > { %3806 = vst [vmem:[#allocation21_spill] sm:$0xff] %v2409_v3 }
  0x83   : > { %663 = vrot.lane.b32.xlu0 %v2128_v37, %s1948_s16  ;;  %665 = vrot.lane.b32.xlu1 %v2130_v38, %s1948_s16 }
  0x85   : > { %v2319_v9 = vpop.permute.xlu1 %233  ;;  %v2321_v11 = vpop.permute.xlu0 %229 }
  0x87   : > { %1179 = vrot.lane.b32.xlu0 %v2317_v8, %s1947_s15  ;;  %1239 = vrot.lane.b32.xlu1 %v2285_v53, %s1948_s16 }
  0x89   : > { %v2341_v21 = vpop.permute.xlu1 %235  ;;  %v2343_v14 = vpop.permute.xlu0 %231 }
  0x8b   : > { %1241 = vrot.lane.b32.xlu0 %v2287_v54, %s1948_s16  ;;  %817 = vrot.lane.b32.xlu1 %v796_v29, %s1947_s15  ;;  %v2472_v54 = vld [vmem:[%s2219_s19 + $0x60] sm:$0xff] }
  0x8d   : > { %v2352_v31 = vpop.permute.xlu1 %239  ;;  %v2354_v33 = vpop.permute.xlu0 %237 }
  0x8f   : > { %865 = vrot.lane.b32.xlu0 %v796_v29, %s1948_s16  ;;  %667 = vrot.lane.b32.xlu1 %v2152_v51, %s1948_s16  ;;  %v1135_v29 = vsel %vm422_vm2, %v1117_v50, %v1118_v18 }
  0x90   : > { %v2428_v13 = vsub.f32 %v1088_v28, %v1135_v29  ;;  %v1120_v28 = vrot.slane %v800_v49, 1  ;;  %v1087_v29 = vsel %vm357_vm0, %v1069_v4, %v1070_v43 }
  0x91   : > { %v2361_v40 = vpop.permute.xlu1 %243  ;;  %v2363_v41 = vpop.permute.xlu0 %241 }
  0x92   : > { %3807 = vst [vmem:[#allocation22_spill] sm:$0xff] %v2428_v13  ;;  %v1133_v24 = vsel %vm422_vm2, %v1119_v44, %v1120_v28 }
  0x93   : > { %1181 = vrot.lane.b32.xlu0 %v2359_v34, %s1947_s15  ;;  %1243 = vrot.lane.b32.xlu1 %v2317_v8, %s1948_s16  ;;  %v2468_v8 = vld [vmem:[%s2219_s19 + $0x58] sm:$0xff] }
  0x94   : > { %v1122_v15 = vrot.slane %v2468_v8, 1 }
  0x95   : > { %v2374_v45 = vpop.permute.xlu1 %247  ;;  %v2376_v46 = vpop.permute.xlu0 %245 }
  0x97   : > { %819 = vrot.lane.b32.xlu0 %v797_v42, %s1947_s15  ;;  %867 = vrot.lane.b32.xlu1 %v797_v42, %s1948_s16 }
  0x99   : > { %v2382_v48 = vpop.permute.xlu1 %251  ;;  %v2384_v12 = vpop.permute.xlu0 %249 }
  0x9b   : > { %669 = vrot.lane.b32.xlu0 %v2154_v52, %s1948_s16  ;;  %1183 = vrot.lane.b32.xlu1 %v2380_v47, %s1947_s15 }
  0x9d   : > { %v2391_v57 = vpop.permute.xlu1 %255  ;;  %v2393_v58 = vpop.permute.xlu0 %253 }
  0x9f   : > { %1245 = vrot.lane.b32.xlu0 %v2359_v34, %s1948_s16  ;;  %821 = vrot.lane.b32.xlu1 %v798_v56, %s1947_s15 }
  0xa1   : > { %v2402_v0 = vpop.permute.xlu1 %259  ;;  %v2404_v2 = vpop.permute.xlu0 %257 }
  0xa3   : > { %869 = vrot.lane.b32.xlu0 %v798_v56, %s1948_s16  ;;  %671 = vrot.lane.b32.xlu1 %v2176_v62, %s1948_s16  ;;  %v1134_v56 = vsel %vm422_vm2, %v1118_v18, %v1119_v44  ;;  %v1086_v18 = vsel %vm357_vm0, %v1070_v43, %v1071_v61  ;;  %v1075_v43 = vrot.slane %v2472_v54, 7  ;;  %v1123_v44 = vrot.slane %v2472_v54, 1 }
  0xa4   : > { %v2461_v4 = vsub.f32 %v1087_v29, %v1134_v56  ;;  %v1074_v56 = vrot.slane %v2468_v8, 7  ;;  %v2488_v35 = vsub.f32 %v1086_v18, %v1133_v24 }
  0xa5   : > { %v2411_v20 = vpop.permute.xlu1 %279  ;;  %v2413_v10 = vpop.permute.xlu0 %277 }
  0xa6   : > { %3808 = vst [vmem:[#allocation23_spill] sm:$0xff] %v2461_v4  ;;  %3810 = vst [vmem:[#allocation25_spill] sm:$0xff] %v2488_v35 }
  0xa7   : > { %1185 = vrot.lane.b32.xlu0 %v2409_v3, %s1947_s15  ;;  %1247 = vrot.lane.b32.xlu1 %v2380_v47, %s1948_s16  ;;  %v801_v47 = vld [vmem:[%s2219_s19 + $0x50] sm:$0xff] }
  0xa8   : > { %v1121_v34 = vrot.slane %v801_v47, 1 }
  0xa9   : > { %v2424_v19 = vpop.permute.xlu1 %283  ;;  %v282_v30 = vpop.permute.xlu0 %281 }
  0xaa   : > { %v1132_v52 = vsel %vm422_vm2, %v1120_v28, %v1121_v34  ;;  %v1131_v37 = vsel %vm422_vm2, %v1121_v34, %v1122_v15 }
  0xab   : > { %823 = vrot.lane.b32.xlu0 %v799_v1, %s1947_s15  ;;  %871 = vrot.lane.b32.xlu1 %v799_v1, %s1948_s16  ;;  %v2455_v1 = vand.u32 127, %v160_v16  ;;  %v1073_v16 = vrot.slane %v801_v47, 7 }
  0xad   : > { %v2430_v39 = vpop.permute.xlu1 %287  ;;  %v2432_v42 = vpop.permute.xlu0 %285  ;;  %vm179_vm4 = vcmp.ge.s32.totalorder %v2455_v1, 1  ;;  %vm180_vm5 = vcmp.le.s32.totalorder %v2455_v1, 126  ;;  %v1083_v28 = vsel %vm357_vm0, %v1073_v16, %v1074_v56 }
  0xae   : > { %v311_v24 = vsel %vm180_vm5, %v282_v30, 0.0  ;;  %v1082_v30 = vsel %vm357_vm0, %v1074_v56, %v1075_v43  ;;  %v263_v34 = vsel %vm179_vm4, %v2319_v9, 0.0 }
  0xaf   : > { %673 = vrot.lane.b32.xlu0 %v2178_v63, %s1948_s16  ;;  %1187 = vrot.lane.b32.xlu1 %v2428_v13, %s1947_s15  ;;  %v2491_v63 = vld [vmem:[%s2219_s19 + $0x70] sm:$0xff] }
  0xb0   : > { %3811 = vst [vmem:[#allocation26_spill] sm:$0xff] %v2491_v63  ;;  %v1125_v38 = vrot.slane %v2491_v63, 1 }
  0xb1   : > { %v2439_v50 = vpop.permute.xlu1 %291  ;;  %v2441_v60 = vpop.permute.xlu0 %289 }
  0xb3   : > { %1249 = vrot.lane.b32.xlu0 %v2409_v3, %s1948_s16  ;;  %825 = vrot.lane.b32.xlu1 %v800_v49, %s1947_s15  ;;  %v1072_v3 = vrot.slane %v800_v49, 7 }
  0xb5   : > { %v2450_v32 = vpop.permute.xlu1 %295  ;;  %v2452_v36 = vpop.permute.xlu0 %293  ;;  %v1085_v62 = vsel %vm357_vm0, %v1071_v61, %v1072_v3  ;;  %v1084_v18 = vsel %vm357_vm0, %v1072_v3, %v1073_v16  ;;  %v309_v16 = vsel %vm180_vm5, %v2413_v10, 0.0  ;;  %v261_v10 = vsel %vm179_vm4, %v2321_v11, 0.0 }
  0xb6   : > { %v2566_v23 = vsub.f32 %v1085_v62, %v1132_v52  ;;  %v266_v62 = vsel %vm179_vm4, %v2352_v31, 0.0  ;;  %v268_v31 = vsel %vm179_vm4, %v2361_v40, 0.0 }
  0xb7   : > { %873 = vrot.lane.b32.xlu0 %v800_v49, %s1948_s16  ;;  %675 = vrot.lane.b32.xlu1 %v2192_v5, %s1948_s16  ;;  %v2475_v49 = vld [vmem:[%s2219_s19 + $0x68] sm:$0xff]  ;;  %v1126_v5 = vrot.slane %v2235_v27, 1 }
  0xb8   : > { %3809 = vst [vmem:[#allocation24_spill] sm:$0xff] %v2475_v49  ;;  %v1124_v55 = vrot.slane %v2475_v49, 1  ;;  %v1076_v51 = vrot.slane %v2475_v49, 7  ;;  %v1130_v49 = vsel %vm422_vm2, %v1122_v15, %v1123_v44  ;;  %v3813_v15 = vrot.slane %v2232_v26, 1  ;;  %3815 = vst [vmem:[#allocation28_spill] sm:$0xff] %v2566_v23 }
  0xb9   : > { %v2477_v53 = vpop.permute.xlu1 %299  ;;  %v2479_v29 = vpop.permute.xlu0 %297  ;;  %v262_v26 = vsel %vm179_vm4, %v2343_v14, 0.0 }
  0xba   : > { %v1129_v3 = vsel %vm422_vm2, %v1123_v44, %v1124_v55  ;;  %v1142_v56 = vsel %vm422_vm2, %v1126_v5, %v3813_v15  ;;  %v1081_v9 = vsel %vm357_vm0, %v1075_v43, %v1076_v51  ;;  %v2555_v43 = vsub.f32 %v261_v10, %v309_v16 }
  0xbb   : > { %1189 = vrot.lane.b32.xlu0 %v2461_v4, %s1947_s15  ;;  %1251 = vrot.lane.b32.xlu1 %v2428_v13, %s1948_s16  ;;  %v1077_v13 = vrot.slane %v2491_v63, 7  ;;  %v310_v63 = vsel %vm180_vm5, %v2411_v20, 0.0  ;;  %v1128_v20 = vsel %vm422_vm2, %v1124_v55, %v1125_v38  ;;  %v3814_v15 = vrot.slane %v2235_v27, 7 }
  0xbc   : > { %v1158_v14 = vsel %vm212_vm3, %v1142_v56, 0.0  ;;  %v313_v27 = vsel %vm180_vm5, %v2432_v42, 0.0  ;;  %v2582_v52 = vsub.f32 %v1081_v9, %v1128_v20  ;;  %v267_v16 = vsel %vm179_vm4, %v2363_v41, 0.0 }
  0xbd   : > { %v2510_v25 = vpop.permute.xlu1 %303  ;;  %v2512_v61 = vpop.permute.xlu0 %301  ;;  %v1080_v44 = vsel %vm357_vm0, %v1076_v51, %v1077_v13  ;;  %v1079_v11 = vsel %vm357_vm0, %v1077_v13, %v3814_v15  ;;  %v312_v51 = vsel %vm180_vm5, %v2424_v19, 0.0  ;;  %v2580_v13 = vsub.f32 %v1082_v30, %v1129_v3 }
  0xbe   : > { %3812 = vst [vmem:[#allocation27_spill] sm:$0xff] %v2510_v25  ;;  %v2535_v25 = vsub.f32 %v263_v34, %v311_v24  ;;  %v2553_v24 = vsub.f32 %v262_v26, %v310_v63  ;;  %v2570_v63 = vsub.f32 %v1083_v28, %v1130_v49  ;;  %v2592_v42 = vsub.f32 %v1079_v11, %v1158_v14 }
  0xbf   : > { %827 = vrot.lane.b32.xlu0 %v801_v47, %s1947_s15  ;;  %875 = vrot.lane.b32.xlu1 %v801_v47, %s1948_s16  ;;  %v1127_v47 = vsel %vm422_vm2, %v1125_v38, %v1126_v5  ;;  %v2568_v38 = vsub.f32 %v1084_v18, %v1131_v37  ;;  %v264_v37 = vsel %vm179_vm4, %v2341_v21, 0.0  ;;  %v265_v49 = vsel %vm179_vm4, %v2354_v33, 0.0 }
  0xc0   : > { %3817 = vst [vmem:[#allocation30_spill] sm:$0xff] %v2570_v63  ;;  %v343_v5 = vrot.slane %v2535_v25, 7  ;;  %v2590_v19 = vsub.f32 %v1080_v44, %v1127_v47  ;;  %3818 = vst [vmem:[#allocation31_spill] sm:$0xff] %v2592_v42  ;;  %v342_v18 = vrot.slane %v2553_v24, 7  ;;  %v3764_v28 = vrot.slane %v2555_v43, 7 }
  0xc1   : > { %v308_v34 = vpop.permute.xlu1 %307  ;;  %v306_v55 = vpop.permute.xlu0 %305  ;;  %3816 = vst [vmem:[#allocation29_spill] sm:$0xff] %v2568_v38  ;;  %v2599_v30 = vsub.f32 %v264_v37, %v312_v51  ;;  %v2614_v33 = vsel %vm179_vm4, %v2374_v45, 0.0  ;;  %v2616_v56 = vsub.f32 %v265_v49, %v313_v27  ;;  %v269_v9 = vsel %vm179_vm4, %v2376_v46, 0.0 }
  0xc2   : > { %v2624_v20 = vsel %vm179_vm4, %v2382_v48, 0.0  ;;  %v371_v40 = vsel %vm357_vm0, %v342_v18, %v343_v5  ;;  %v408_v41 = vrot.slane %v2535_v25, 1  ;;  %v407_v45 = vrot.slane %v2553_v24, 1 }
  0xc3   : > { %677 = vrot.lane.b32.xlu0 %v2194_v6, %s1948_s16  ;;  %1191 = vrot.lane.b32.xlu1 %v2488_v35, %s1947_s15  ;;  %v3765_v10 = vrot.slane %v2555_v43, 1  ;;  %v314_v46 = vsel %vm180_vm5, %v2430_v39, 0.0  ;;  %v315_v48 = vsel %vm180_vm5, %v2441_v60, 0.0  ;;  %v409_v26 = vrot.slane %v2599_v30, 1 }
  0xc4   : > { %v324_v44 = vsel %vm180_vm5, %v308_v34, 0.0  ;;  %v323_v47 = vsel %vm180_vm5, %v306_v55, 0.0  ;;  %v372_v39 = vsel %vm357_vm0, %v3764_v28, %v342_v18  ;;  %v276_v60 = vsel %vm179_vm4, %v2402_v0, 0.0 }
  0xc5   : > { %v2601_v3 = vpop.permute.xlu0 %599  ;;  %v2603_v21 = vpop.permute.xlu1 %601  ;;  %v275_v34 = vsel %vm179_vm4, %v2404_v2, 0.0  ;;  %v392_v14 = vadd.f32 %v371_v40, %v2535_v25  ;;  %v345_v55 = vrot.slane %v2616_v56, 7  ;;  %v344_v51 = vrot.slane %v2599_v30, 7 }
  0xc6   : > { %v2665_v27 = vsub.f32 %v266_v62, %v314_v46  ;;  %v2667_v37 = vsub.f32 %v267_v16, %v315_v48  ;;  %v436_v0 = vsel %vm422_vm2, %v407_v45, %v408_v41  ;;  %v271_v2 = vsel %vm179_vm4, %v2384_v12, 0.0 }
  0xc7   : > { %1253 = vrot.lane.b32.xlu0 %v2461_v4, %s1948_s16  ;;  %829 = vrot.lane.b32.xlu1 %v2468_v8, %s1947_s15  ;;  %v2676_v49 = vsub.f32 %v276_v60, %v324_v44  ;;  %v2678_v18 = vsub.f32 %v275_v34, %v323_v47  ;;  %v391_v62 = vadd.f32 %v372_v39, %v2553_v24  ;;  %v273_v16 = vsel %vm179_vm4, %v2393_v58, 0.0 }
  0xc8   : > { %v2699_v46 = vsel %vm422_vm2, %v3765_v10, %v407_v45  ;;  %v435_v24 = vsel %vm422_vm2, %v408_v41, %v409_v26  ;;  %v316_v58 = vsel %vm180_vm5, %v2439_v50, 0.0  ;;  %v346_v47 = vrot.slane %v2665_v27, 7 }
  0xc9   : > { %v2648_v15 = vpop.permute.xlu0 %603  ;;  %v2650_v11 = vpop.permute.xlu1 %605  ;;  %v456_v48 = vadd.f32 %v436_v0, %v391_v62  ;;  %v457_v44 = vadd.f32 %v435_v24, %v392_v14  ;;  %v3767_v39 = vrot.slane %v2667_v37, 7  ;;  %v317_v45 = vsel %vm180_vm5, %v2452_v36, 0.0 }
  0xca   : > { %v370_v41 = vsel %vm357_vm0, %v343_v5, %v344_v51  ;;  %v410_v50 = vrot.slane %v2616_v56, 1  ;;  %v3768_v60 = vrot.slane %v2676_v49, 7  ;;  %v3766_v14 = vrot.slane %v2678_v18, 7 }
  0xcb   : > { %877 = vrot.lane.b32.xlu0 %v2468_v8, %s1948_s16  ;;  %679 = vrot.lane.b32.xlu1 %v2210_v22, %s1948_s16  ;;  %v2686_v8 = vsel %vm179_vm4, %v2391_v57, 0.0  ;;  %v369_v57 = vsel %vm357_vm0, %v344_v51, %v345_v55  ;;  %v411_v36 = vrot.slane %v2665_v27, 1  ;;  %v2727_v62 = vsub.f32 %v268_v31, %v316_v58 }
  0xcc   : > { %v394_v0 = vadd.f32 %v369_v57, %v2616_v56  ;;  %v319_v25 = vsel %vm180_vm5, %v2479_v29, 0.0  ;;  %v318_v24 = vsel %vm180_vm5, %v2450_v32, 0.0  ;;  %v2739_v28 = vsub.f32 %v269_v9, %v317_v45 }
  0xcd   : > { %v2691_v40 = vpop.permute.xlu0 %607  ;;  %v2693_v12 = vpop.permute.xlu1 %609  ;;  %v472_v34 = vmul.f32 0.33333334, %v456_v48  ;;  %v473_v10 = vmul.f32 0.33333334, %v457_v44  ;;  %v367_v31 = vsel %vm357_vm0, %v346_v47, %v3767_v39  ;;  %v412_v56 = vrot.slane %v2667_v37, 1  ;;  %v3822_v39 = vld [vmem:[#allocation27_spill] sm:$0xff] }
  0xce   : > { %v321_v29 = vsel %vm180_vm5, %v2512_v61, 0.0  ;;  %v393_v32 = vadd.f32 %v370_v41, %v2599_v30  ;;  %v2752_v9 = vsub.f32 %v271_v2, %v319_v25  ;;  %v434_v57 = vsel %vm422_vm2, %v409_v26, %v410_v50 }
  0xcf   : > { %1193 = vrot.lane.b32.xlu0 %v2566_v23, %s1947_s15  ;;  %1255 = vrot.lane.b32.xlu1 %v2488_v35, %s1948_s16  ;;  %v358_v61 = vsel %vm357_vm0, %v3766_v14, %v3768_v60  ;;  %v3819_v58 = vrot.slane %v2555_v43, 1  ;;  %v3820_v48 = vrot.slane %v2676_v49, 1  ;;  %v2771_v2 = vsub.f32 %v2614_v33, %v318_v24 }
  0xd0   : > { %v405_v45 = vadd.f32 %v358_v61, %v2676_v49  ;;  %v3769_v25 = vrot.slane %v2739_v28, 7  ;;  %v2784_v14 = vsub.f32 %v273_v16, %v321_v29  ;;  %v433_v33 = vsel %vm422_vm2, %v410_v50, %v411_v36  ;;  %v3821_v50 = vld [vmem:[#allocation9_spill] sm:$0xff] }
  0xd1   : > { %v2732_v5 = vpop.permute.xlu0 %611  ;;  %v2734_v51 = vpop.permute.xlu1 %613  ;;  %v438_v30 = vsel %vm422_vm2, %v3820_v48, %v3819_v58  ;;  %v368_v24 = vsel %vm357_vm0, %v345_v55, %v346_v47  ;;  %v458_v58 = vadd.f32 %v434_v57, %v393_v32  ;;  %v459_v61 = vadd.f32 %v433_v33, %v394_v0 }
  0xd2   : > { %v454_v41 = vsel %vm212_vm3, %v438_v30, 0.0  ;;  %v413_v30 = vrot.slane %v2727_v62, 1  ;;  %v3770_v29 = vrot.slane %v2752_v9, 7  ;;  %v432_v55 = vsel %vm422_vm2, %v411_v36, %v412_v56 }
  0xd3   : > { %831 = vrot.lane.b32.xlu0 %v2472_v54, %s1947_s15  ;;  %879 = vrot.lane.b32.xlu1 %v2472_v54, %s1948_s16  ;;  %v320_v54 = vsel %vm180_vm5, %v2477_v53, 0.0  ;;  %v348_v53 = vrot.slane %v2727_v62, 7  ;;  %v2793_v48 = vadd.f32 %v454_v41, %v405_v45  ;;  %v396_v47 = vadd.f32 %v367_v31, %v2667_v37 }
  0xd4   : > { %v2797_v16 = vsub.f32 %v2624_v20, %v320_v54  ;;  %v322_v0 = vsel %vm180_vm5, %v3822_v39, 0.0  ;;  %v2808_v45 = vmul.f32 %v472_v34, %v472_v34  ;;  %v395_v20 = vadd.f32 %v368_v24, %v2665_v27 }
  0xd5   : > { %v2776_v26 = vpop.permute.xlu0 %615  ;;  %v2778_v44 = vpop.permute.xlu1 %617  ;;  %v350_v54 = vrot.slane %v2771_v2, 7  ;;  %v365_v41 = vsel %vm357_vm0, %v348_v53, %v3769_v25  ;;  %v2817_v31 = vmul.f32 %v473_v10, %v473_v10  ;;  %v415_v33 = vrot.slane %v2771_v2, 1 }
  0xd6   : > { %v474_v39 = vmul.f32 0.33333334, %v458_v58  ;;  %v475_v34 = vmul.f32 0.33333334, %v459_v61  ;;  %v460_v60 = vadd.f32 %v432_v55, %v395_v20  ;;  %v2828_v25 = vsub.f32 %v2686_v8, %v322_v0 }
  0xd7   : > { %619 = vrot.lane.b32.xlu0 %v2168_v59, %s1947_s15  ;;  %681 = vrot.lane.b32.xlu1 %v3821_v50, %s1948_s16  ;;  %3823 = vst [vmem:[#allocation9_spill] sm:$0xff] %v2817_v31  ;;  %v363_v24 = vsel %vm357_vm0, %v350_v54, %v3770_v29  ;;  %v431_v10 = vsel %vm422_vm2, %v412_v56, %v413_v30  ;;  %v414_v61 = vrot.slane %v2739_v28, 1  ;;  %v3824_v55 = vrot.slane %v2555_v43, 7 }
  0xd8   : > { %v398_v58 = vadd.f32 %v365_v41, %v2739_v28  ;;  %v3825_v20 = vrot.slane %v2676_v49, 7  ;;  %v461_v0 = vadd.f32 %v431_v10, %v396_v47  ;;  %v3826_v56 = vrot.slane %v2784_v14, 7  ;;  %v3829_v47 = vld [vmem:[#allocation24_spill] sm:$0xff] }
  0xd9   : > { %v808_v32 = vpop.permute.xlu0 %807  ;;  %v838_v57 = vpop.permute.xlu1 %837  ;;  %v3827_v41 = vrot.slane %v2797_v16, 7  ;;  %v3828_v4 = vrot.slane %v2667_v37, 7  ;;  %v2857_v10 = vmul.f32 %v474_v39, %v474_v39  ;;  %v476_v36 = vmul.f32 0.33333334, %v460_v60 }
  0xda   : > { %v373_v29 = vsel %vm357_vm0, %v3825_v20, %v3824_v55  ;;  %v400_v55 = vadd.f32 %v363_v24, %v2752_v9  ;;  %v2859_v20 = vmul.f32 %v475_v34, %v475_v34  ;;  %v3776_v31 = vrot.slane %v2828_v25, 7 }
  0xdb   : > { %1195 = vrot.lane.b32.xlu0 %v2568_v38, %s1947_s15  ;;  %1257 = vrot.lane.b32.xlu1 %v2566_v23, %s1948_s16  ;;  %v416_v23 = vrot.slane %v2752_v9, 1  ;;  %v361_v35 = vsel %vm357_vm0, %v3827_v41, %v3826_v56  ;;  %v366_v7 = vsel %vm357_vm0, %v3828_v4, %v348_v53  ;;  %v374_v4 = vsel %vm181_vm1, %v373_v29, 0.0 }
  0xdc   : > { %v2869_v37 = vadd.f32 %v361_v35, %v2784_v14  ;;  %v477_v34 = vmul.f32 0.33333334, %v461_v0  ;;  %v397_v60 = vadd.f32 %v366_v7, %v2727_v62  ;;  %v430_v24 = vsel %vm422_vm2, %v413_v30, %v414_v61  ;;  %v3830_v7 = vld [vmem:[#allocation10_spill] sm:$0xff] }
  0xdd   : > { %v856_v27 = vpop.permute.xlu0 %855  ;;  %v886_v8 = vpop.permute.xlu1 %885  ;;  %v632_v0 = vsel %vm179_vm4, %v2603_v21, 0.0  ;;  %v390_v62 = vadd.f32 %v374_v4, %v2555_v43  ;;  %v2888_v30 = vmul.f32 %v476_v36, %v476_v36  ;;  %v3831_v41 = vrot.slane %v2739_v28, 7 }
  0xde   : > { %v887_v29 = vsel %vm180_vm5, %v856_v27, 0.0  ;;  %v902_v35 = vsel %vm180_vm5, %v886_v8, 0.0  ;;  %v3832_v27 = vrot.slane %v2678_v18, 7  ;;  %v839_v21 = vsel %vm179_vm4, %v808_v32, 0.0  ;;  %v3833_v32 = vld [vmem:[#allocation2_spill] sm:$0xff] }
  0xdf   : > { %833 = vrot.lane.b32.xlu0 %v3829_v47, %s1947_s15  ;;  %881 = vrot.lane.b32.xlu1 %v3829_v47, %s1948_s16  ;;  %v631_v47 = vsel %vm179_vm4, %v2601_v3, 0.0  ;;  %v364_v3 = vsel %vm357_vm0, %v3831_v41, %v350_v54  ;;  %v854_v43 = vsel %vm179_vm4, %v838_v57, 0.0  ;;  %v462_v28 = vadd.f32 %v430_v24, %v397_v60 }
  0xe0   : > { %v359_v8 = vsel %vm357_vm0, %v3776_v31, %v3832_v27  ;;  %v2906_v36 = vsub.f32 %v839_v21, %v887_v29  ;;  %v2908_v54 = vsub.f32 %v854_v43, %v902_v35  ;;  %v429_v42 = vsel %vm422_vm2, %v414_v61, %v415_v33  ;;  %v3834_v29 = vld [vmem:[#allocation3_spill] sm:$0xff] }
  0xe1   : > { %v810_v53 = vpop.permute.xlu0 %809  ;;  %v858_v39 = vpop.permute.xlu1 %857  ;;  %v428_v27 = vsel %vm422_vm2, %v415_v33, %v416_v23  ;;  %v2915_v31 = vadd.f32 %v631_v47, %v3833_v32  ;;  %v2917_v57 = vmul.f32 %v477_v34, %v477_v34  ;;  %v463_v56 = vadd.f32 %v429_v42, %v398_v58 }
  0xe2   : > { %v399_v60 = vadd.f32 %v364_v3, %v2771_v2  ;;  %v2921_v24 = vadd.f32 %v359_v8, %v2678_v18  ;;  %v2924_v35 = vadd.f32 %v632_v0, %v3834_v29  ;;  %v633_v61 = vsel %vm179_vm4, %v2648_v15, 0.0  ;;  %v3836_v8 = vld [vmem:[#allocation4_spill] sm:$0xff] }
  0xe3   : > { %621 = vrot.lane.b32.xlu0 %v3830_v7, %s1947_s15  ;;  %683 = vrot.lane.b32.xlu1 %v2168_v59, %s1948_s16  ;;  %v455_v33 = vadd.f32 %v2699_v46, %v390_v62  ;;  %v634_v42 = vsel %vm179_vm4, %v2650_v11, 0.0  ;;  %v478_v2 = vmul.f32 0.33333334, %v462_v28  ;;  %v3835_v34 = vrot.slane %v2797_v16, 1 }
  0xe4   : > { %v464_v58 = vadd.f32 %v428_v27, %v399_v60  ;;  %v919_v15 = vrot.slane %v2906_v36, 7  ;;  %v3777_v0 = vrot.slane %v2908_v54, 7  ;;  %v840_v46 = vsel %vm179_vm4, %v810_v53, 0.0  ;;  %v3839_v60 = vld [vmem:[#allocation5_spill] sm:$0xff] }
  0xe5   : > { %v812_v4 = vpop.permute.xlu0 %811  ;;  %v860_v41 = vpop.permute.xlu1 %859  ;;  %v427_v47 = vsel %vm422_vm2, %v416_v23, %v3835_v34  ;;  %v888_v11 = vsel %vm180_vm5, %v858_v39, 0.0  ;;  %v2948_v21 = vadd.f32 %v633_v61, %v3836_v8  ;;  %v479_v43 = vmul.f32 0.33333334, %v463_v56  ;;  %v3842_v8 = vld [vmem:[#allocation6_spill] sm:$0xff] }
  0xe6   : > { %v465_v28 = vadd.f32 %v427_v47, %v400_v55  ;;  %v3837_v27 = vrot.slane %v2797_v16, 7  ;;  %v3838_v23 = vrot.slane %v2752_v9, 7  ;;  %v2957_v29 = vadd.f32 %v634_v42, %v3839_v60  ;;  %v3840_v55 = vld [vmem:[#allocation26_spill] sm:$0xff] }
  0xe7   : > { %1197 = vrot.lane.b32.xlu0 %v2570_v63, %s1947_s15  ;;  %1259 = vrot.lane.b32.xlu1 %v2568_v38, %s1948_s16  ;;  %v635_v53 = vsel %vm179_vm4, %v2691_v40, 0.0  ;;  %v636_v39 = vsel %vm179_vm4, %v2693_v12, 0.0  ;;  %v471_v56 = vmul.f32 0.33333334, %v455_v33  ;;  %v2967_v61 = vsub.f32 %v840_v46, %v888_v11 }
  0xe8   : > { %v362_v32 = vsel %vm357_vm0, %v3838_v23, %v3837_v27  ;;  %v841_v9 = vsel %vm179_vm4, %v812_v4, 0.0  ;;  %v889_v42 = vsel %vm180_vm5, %v860_v41, 0.0  ;;  %v3841_v40 = vrot.slane %v2784_v14, 1  ;;  %v3843_v23 = vld [vmem:[#allocation7_spill] sm:$0xff] }
  0xe9   : > { %v814_v62 = vpop.permute.xlu0 %813  ;;  %v862_v3 = vpop.permute.xlu1 %861  ;;  %v950_v33 = vsel %vm357_vm0, %v3777_v0, %v919_v15  ;;  %v2987_v46 = vmul.f32 %v478_v2, %v478_v2  ;;  %v480_v41 = vmul.f32 0.33333334, %v464_v58  ;;  %v401_v11 = vadd.f32 %v362_v32, %v2797_v16  ;;  %v3844_v0 = vld [vmem:[#allocation11_spill] sm:$0xff] }
  0xea   : > { %v426_v12 = vsel %vm422_vm2, %v3835_v34, %v3841_v40  ;;  %v2991_v27 = vadd.f32 %v635_v53, %v3842_v8  ;;  %v2994_v60 = vadd.f32 %v636_v39, %v3843_v23  ;;  %v481_v40 = vmul.f32 0.33333334, %v465_v28 }
  0xeb   : > { %835 = vrot.lane.b32.xlu0 %v3840_v55, %s1947_s15  ;;  %883 = vrot.lane.b32.xlu1 %v3840_v55, %s1948_s16  ;;  %v2996_v55 = vmul.f32 %v479_v43, %v479_v43  ;;  %v2998_v34 = vsub.f32 %v841_v9, %v889_v42  ;;  %v466_v38 = vadd.f32 %v426_v12, %v401_v11  ;;  %v3845_v2 = vrot.slane %v2828_v25, 1 }
  0xec   : > { %v3846_v58 = vrot.slane %v2784_v14, 1  ;;  %v3847_v32 = vrot.slane %v2828_v25, 7  ;;  %v3848_v53 = vrot.slane %v2784_v14, 7  ;;  %v984_v28 = vrot.slane %v2967_v61, 1 }
  0xed   : > { %v1176_v47 = vpop.permute.xlu0 %1175  ;;  %v2985_v4 = vpop.permute.xlu1 %1177  ;;  %v3017_v39 = vmul.f32 %v471_v56, %v471_v56  ;;  %v951_v9 = vsel %vm181_vm1, %v950_v33, 0.0  ;;  %v637_v12 = vsel %vm179_vm4, %v2732_v5, 0.0  ;;  %v638_v14 = vsel %vm179_vm4, %v2734_v51, 0.0  ;;  %v3853_v56 = vld [vmem:[#allocation8_spill] sm:$0xff] }
  0xee   : > { %v425_v16 = vsel %vm422_vm2, %v3846_v58, %v3845_v2  ;;  %v360_v43 = vsel %vm357_vm0, %v3848_v53, %v3847_v32  ;;  %v920_v11 = vrot.slane %v2967_v61, 7  ;;  %v3029_v2 = vmul.f32 %v480_v41, %v480_v41 }
  0xef   : > { %623 = vrot.lane.b32.xlu0 %v3844_v0, %s1947_s15  ;;  %685 = vrot.lane.b32.xlu1 %v3830_v7, %s1948_s16  ;;  %v467_v42 = vadd.f32 %v425_v16, %v2869_v37  ;;  %v3032_v58 = vmul.f32 %v481_v40, %v481_v40  ;;  %v403_v37 = vadd.f32 %v360_v43, %v2828_v25  ;;  %v3849_v33 = vrot.slane %v2678_v18, 1 }
  0xf0   : > { %v3850_v5 = vrot.slane %v2828_v25, 1  ;;  %v3780_v51 = vrot.slane %v2998_v34, 1  ;;  %v967_v41 = vadd.f32 %v951_v9, %v2906_v36  ;;  %v482_v32 = vmul.f32 0.33333334, %v466_v38 }
  0xf1   : > { %v816_v8 = vpop.permute.xlu0 %815  ;;  %v864_v23 = vpop.permute.xlu1 %863  ;;  %v3851_v40 = vrot.slane %v2676_v49, 1  ;;  %v3852_v53 = vmov %v3849_v33  ;;  %v3052_v25 = vadd.f32 %v637_v12, %v3853_v56  ;;  %v483_v49 = vmul.f32 0.33333334, %v467_v42 }
  0xf2   : > { %v424_v16 = vsel %vm422_vm2, %v3850_v5, %v3849_v33  ;;  %v3055_v33 = vadd.f32 %v638_v14, %v2194_v6  ;;  %v3854_v5 = vrot.slane %v2906_v36, 1  ;;  %v949_v18 = vsel %vm357_vm0, %v919_v15, %v920_v11 }
  0xf3   : > { %1199 = vrot.lane.b32.xlu0 %v2580_v13, %s1947_s15  ;;  %v423_v43 = vsel %vm422_vm2, %v3852_v53, %v3851_v40  ;;  %1261 = vrot.lane.b32.xlu1 %v2570_v63, %s1948_s16  ;;  %v842_v9 = vsel %vm179_vm4, %v814_v62, 0.0  ;;  %v890_v12 = vsel %vm180_vm5, %v862_v3, 0.0  ;;  %v1207_v6 = vsel %vm179_vm4, %v1176_v47, 0.0  ;;  %v3855_v62 = vld [vmem:[#allocation14_spill] sm:$0xff] }
  0xf4   : > { %v1013_v38 = vsel %vm422_vm2, %v3854_v5, %v984_v28  ;;  %v468_v53 = vadd.f32 %v424_v16, %v403_v37  ;;  %v469_v15 = vadd.f32 %v423_v43, %v2921_v24  ;;  %v1012_v47 = vsel %vm422_vm2, %v984_v28, %v3780_v51  ;;  %v3856_v24 = vld [vmem:[#allocation12_spill] sm:$0xff] }
  0xf5   : > { %v664_v14 = vpop.permute.xlu0 %663  ;;  %v666_v56 = vpop.permute.xlu1 %665  ;;  %v1031_v3 = vadd.f32 %v1013_v38, %v967_v41  ;;  %v3083_v63 = vmul.f32 %v482_v32, %v482_v32  ;;  %v3087_v37 = vsub.f32 %v842_v9, %v890_v12  ;;  %v1223_v16 = vadd.f32 %v1207_v6, %v3856_v24 }
  0xf6   : > { %v695_v40 = vsel %vm180_vm5, %v664_v14, 0.0  ;;  %v696_v42 = vsel %vm180_vm5, %v666_v56, 0.0  ;;  %v968_v14 = vadd.f32 %v949_v18, %v2967_v61  ;;  %v921_v56 = vrot.slane %v2998_v34, 7 }
  0xf7   : > { %v711_v5 = vadd.f32 %v695_v40, %v2915_v31  ;;  %625 = vrot.lane.b32.xlu0 %v3855_v62, %s1947_s15  ;;  %687 = vrot.lane.b32.xlu1 %v3844_v0, %s1948_s16  ;;  %v843_v31 = vsel %vm179_vm4, %v816_v8, 0.0  ;;  %v891_v41 = vsel %vm180_vm5, %v864_v23, 0.0  ;;  %v712_v32 = vadd.f32 %v696_v42, %v2924_v35  ;;  %v3857_v42 = vld [vmem:[#allocation13_spill] sm:$0xff] }
  0xf8   : > { %v1208_v38 = vsel %vm179_vm4, %v2985_v4, 0.0  ;;  %v1032_v9 = vadd.f32 %v1012_v47, %v968_v14  ;;  %v3102_v12 = vmul.f32 %v483_v49, %v483_v49  ;;  %v639_v8 = vsel %vm179_vm4, %v2776_v26, 0.0 }
  0xf9   : > { %v727_v28 = vmul.f32 0.33333334, %v711_v5  ;;  %v1180_v43 = vpop.permute.xlu0 %1179  ;;  %v1240_v61 = vpop.permute.xlu1 %1239  ;;  %v640_v35 = vsel %vm179_vm4, %v2778_v44, 0.0  ;;  %v1047_v23 = vmul.f32 0.33333334, %v1031_v3  ;;  %v948_v4 = vsel %vm357_vm0, %v920_v11, %v921_v56 }
  0xfa   : > { %v1271_v18 = vsel %vm180_vm5, %v1240_v61, 0.0  ;;  %v986_v40 = vrot.slane %v3087_v37, 1  ;;  %v3115_v49 = vsub.f32 %v843_v31, %v891_v41  ;;  %v484_v26 = vmul.f32 0.33333334, %v468_v53 }
  0xfb   : > { %v1287_v6 = vadd.f32 %v1271_v18, %v1223_v16  ;;  %1201 = vrot.lane.b32.xlu0 %v2582_v52, %s1947_s15  ;;  %1263 = vrot.lane.b32.xlu1 %v2580_v13, %s1948_s16  ;;  %v1224_v5 = vadd.f32 %v1208_v38, %v3857_v42  ;;  %v759_v47 = vmul.f32 %v727_v28, %v727_v28  ;;  %v728_v44 = vmul.f32 0.33333334, %v712_v32  ;;  %v3858_v38 = vld [vmem:[#allocation15_spill] sm:$0xff] }
  0xfc   : > { %v922_v16 = vrot.slane %v3087_v37, 7  ;;  %v1048_v61 = vmul.f32 0.33333334, %v1032_v9  ;;  %v485_v18 = vmul.f32 0.33333334, %v469_v15  ;;  %v3124_v31 = vadd.f32 %v639_v8, %v2210_v22 }
  0xfd   : > { %v1303_v3 = vmul.f32 0.33333334, %v1287_v6  ;;  %v1242_v14 = vpop.permute.xlu0 %1241  ;;  %v818_v24 = vpop.permute.xlu1 %817  ;;  %v1319_v41 = vmul.f32 %v1047_v23, %v1047_v23  ;;  %v969_v28 = vadd.f32 %v948_v4, %v2998_v34  ;;  %v987_v32 = vrot.slane %v3115_v49, 1 }
  0xfe   : > { %v1272_v11 = vsel %vm180_vm5, %v1242_v14, 0.0  ;;  %v3859_v9 = vrot.slane %v2998_v34, 1  ;;  %v486_v22 = vmul.f32 0.33333334, %v2793_v48  ;;  %v775_v8 = vadd.f32 %v759_v47, %v3017_v39 }
  0xff   : > { %v1335_v51 = vmul.f32 %v1303_v3, %v1303_v3  ;;  %v1288_v53 = vadd.f32 %v1272_v11, %v1224_v5  ;;  %627 = vrot.lane.b32.xlu0 %v3858_v38, %s1947_s15  ;;  %689 = vrot.lane.b32.xlu1 %v3855_v62, %s1948_s16  ;;  %v760_v23 = vmul.f32 %v728_v44, %v728_v44  ;;  %v1209_v48 = vsel %vm179_vm4, %v1180_v43, 0.0 }
 0x100   : > { %v1011_v15 = vsel %vm422_vm2, %v3859_v9, %v986_v40  ;;  %v947_v4 = vsel %vm357_vm0, %v921_v56, %v922_v16  ;;  %v1320_v14 = vmul.f32 %v1048_v61, %v1048_v61  ;;  %v1010_v43 = vsel %vm422_vm2, %v986_v40, %v987_v32 }
 0x101   : > { %v1351_v6 = vadd.f32 %v1335_v51, %v1319_v41  ;;  %v1304_v42 = vmul.f32 0.33333334, %v1288_v53  ;;  %v866_v5 = vpop.permute.xlu0 %865  ;;  %v668_v3 = vpop.permute.xlu1 %667  ;;  %v844_v51 = vsel %vm179_vm4, %v818_v24, 0.0  ;;  %v1033_v44 = vadd.f32 %v1011_v15, %v969_v28 }
 0x102   : > { %v892_v11 = vsel %vm180_vm5, %v866_v5, 0.0  ;;  %v697_v34 = vsel %vm180_vm5, %v668_v3, 0.0  ;;  %v970_v61 = vadd.f32 %v947_v4, %v3087_v37  ;;  %v923_v24 = vrot.slane %v3115_v49, 7  ;;  %v3860_v3 = vld [vmem:[#allocation17_spill] sm:$0xff] }
 0x103   : > { %v3146_v9 = vmul.f32 %v1351_v6, %v775_v8  ;;  %v1336_v39 = vmul.f32 %v1304_v42, %v1304_v42  ;;  %1203 = vrot.lane.b32.xlu0 %v2590_v19, %s1947_s15  ;;  %v3152_v56 = vsub.f32 %v844_v51, %v892_v11  ;;  %v713_v47 = vadd.f32 %v697_v34, %v2948_v21 }
 0x104   : > { %1265 = vrot.lane.b32.xlu1 %v2582_v52, %s1948_s16  ;;  %v776_v41 = vadd.f32 %v760_v23, %v2808_v45  ;;  %v1225_v21 = vadd.f32 %v1209_v48, %v3860_v3  ;;  %v3169_v15 = vadd.f32 %v640_v35, %v3821_v50  ;;  %v3781_v37 = vrot.slane %v2908_v54, 1  ;;  %v3861_v45 = vld [vmem:[#allocation18_spill] sm:$0xff] }
 0x105   : > { %v1352_v53 = vadd.f32 %v1336_v39, %v1320_v14  ;;  %v1182_v42 = vpop.permute.xlu0 %1181  ;;  %v1244_v5 = vpop.permute.xlu1 %1243  ;;  %v729_v11 = vmul.f32 0.33333334, %v713_v47  ;;  %1873 = vrsqrt.f32 %v3146_v9  ;;  %v1034_v23 = vadd.f32 %v1010_v43, %v970_v61 }
 0x106   : > { %v1273_v28 = vsel %vm180_vm5, %v1244_v5, 0.0  ;;  %v988_v4 = vrot.slane %v3152_v56, 1  ;;  %v1049_v14 = vmul.f32 0.33333334, %v1033_v44  ;;  %v3179_v48 = vmul.f32 %v484_v26, %v484_v26 }
 0x107   : > { %v3172_v40 = vmul.f32 %v1352_v53, %v776_v41  ;;  %629 = vrot.lane.b32.xlu0 %v3861_v45, %s1947_s15  ;;  %v1289_v34 = vadd.f32 %v1273_v28, %v1225_v21  ;;  %v946_v50 = vsel %vm357_vm0, %v922_v16, %v923_v24  ;;  %v3782_v35 = vrot.slane %v3152_v56, 7  ;;  %v3864_v21 = vld [vmem:[#allocation31_spill] sm:$0xff] }
 0x108   : > { %691 = vrot.lane.b32.xlu1 %v3858_v38, %s1948_s16  ;;  %v3184_v47 = vmul.f32 %v485_v18, %v485_v18  ;;  %v3186_v5 = vmul.f32 %v486_v22, %v486_v22  ;;  %v761_v43 = vmul.f32 %v729_v11, %v729_v11  ;;  %v1527_v3 = vadd.f32 %v1351_v6, %v775_v8 }
 0x109   : > { %v820_v39 = vpop.permute.xlu0 %819  ;;  %v868_v51 = vpop.permute.xlu1 %867  ;;  %v1305_v61 = vmul.f32 0.33333334, %v1289_v34  ;;  %v1050_v16 = vmul.f32 0.33333334, %v1034_v23  ;;  %1875 = vrsqrt.f32 %v3172_v40  ;;  %v3865_v18 = vrot.slane %v2906_v36, 1 }
 0x10a   : > { %3862 = vst [vmem:[#allocation27_spill] sm:$0xff] %v3184_v47  ;;  %3863 = vst [vmem:[#allocation24_spill] sm:$0xff] %v3186_v5  ;;  %v845_v44 = vsel %vm179_vm4, %v820_v39, 0.0  ;;  %v893_v26 = vsel %vm180_vm5, %v868_v51, 0.0  ;;  %v1528_v11 = vadd.f32 %v1352_v53, %v776_v41  ;;  %v1321_v28 = vmul.f32 %v1049_v14, %v1049_v14  ;;  %v3866_v39 = vld [vmem:[#allocation9_spill] sm:$0xff] }
 0x10b   : > { %1205 = vrot.lane.b32.xlu0 %v3864_v21, %s1947_s15  ;;  %v1014_v22 = vsel %vm422_vm2, %v3781_v37, %v3865_v18  ;;  %v1337_v34 = vmul.f32 %v1305_v61, %v1305_v61  ;;  %v1009_v8 = vsel %vm422_vm2, %v987_v32, %v988_v4  ;;  %v971_v36 = vadd.f32 %v946_v50, %v3115_v49 }
 0x10c   : > { %1267 = vrot.lane.b32.xlu1 %v2590_v19, %s1948_s16  ;;  %v945_v6 = vsel %vm357_vm0, %v923_v24, %v3782_v35  ;;  %v1210_v41 = vsel %vm179_vm4, %v1182_v42, 0.0  ;;  %v3216_v53 = vsub.f32 %v845_v44, %v893_v26  ;;  %v777_v51 = vadd.f32 %v761_v43, %v3866_v39 }
 0x10d   : > { %v670_v23 = vpop.permute.xlu0 %669  ;;  %v1184_v14 = vpop.permute.xlu1 %1183  ;;  %v1353_v61 = vadd.f32 %v1337_v34, %v1321_v28  ;;  %v3223_v49 = vsel %vm212_vm3, %v1014_v22, 0.0  ;;  %v1543_v50 = vadd.f32 0.0026143792, %v1527_v3  ;;  %v1322_v42 = vmul.f32 %v1050_v16, %v1050_v16  ;;  %v3868_v28 = vld [vmem:[#allocation19_spill] sm:$0xff] }
 0x10e   : > { %v698_v32 = vsel %vm180_vm5, %v670_v23, 0.0  ;;  %v1035_v44 = vadd.f32 %v1009_v8, %v971_v36  ;;  %v3228_v37 = vadd.f32 0.0026143792, %v1528_v11  ;;  %v972_v43 = vadd.f32 %v945_v6, %v3152_v56 }
 0x10f   : > { %v714_v24 = vadd.f32 %v698_v32, %v2957_v29  ;;  %693 = vrot.lane.b32.xlu0 %v3861_v45, %s1948_s16  ;;  %v1874_v26 = vpop.eup %1873  ;;  %v1226_v34 = vadd.f32 %v1210_v41, %v3868_v28  ;;  %v3232_v23 = vmul.f32 %v1353_v61, %v777_v51  ;;  %v3783_v3 = vrot.slane %v3216_v53, 1 }
 0x110   : > { %1269 = vrot.lane.b32.xlu1 %v3864_v21, %s1948_s16  ;;  %v1384_v16 = vmul.f32 %v1874_v26, %v3146_v9  ;;  %vm1385_vm6 = vcmp.eq.f32.partialorder %v3146_v9, inf  ;;  %vm1387_vm7 = vcmp.eq.f32.partialorder %v3146_v9, 0.0  ;;  %v1388_v8 = vand.u32 2147483648, %v3146_v9 }
 0x111   : > { %v730_v29 = vmul.f32 0.33333334, %v714_v24  ;;  %v1246_v22 = vpop.permute.xlu0 %1245  ;;  %v822_v39 = vpop.permute.xlu1 %821  ;;  %1877 = vrsqrt.f32 %v3232_v23  ;;  %v1051_v6 = vmul.f32 0.33333334, %v1035_v44  ;;  %vm1392_vm8 = vcmp.eq.f32.partialorder %v3172_v40, inf }
 0x112   : > { %v1274_v11 = vsel %vm180_vm5, %v1246_v22, 0.0  ;;  %v1386_v41 = vsel %vm1385_vm6, %v3146_v9, %v1384_v16  ;;  %v3784_v32 = vrot.slane %v3216_v53, 7  ;;  %v1211_v18 = vsel %vm179_vm4, %v1184_v14, 0.0 }
 0x113   : > { %v1290_v36 = vadd.f32 %v1274_v11, %v1226_v34  ;;  %v1389_v24 = vsel %vm1387_vm7, %v1388_v8, %v1386_v41  ;;  %vm1394_vm9 = vcmp.eq.f32.partialorder %v3172_v40, 0.0  ;;  %v1876_v26 = vpop.eup %1875  ;;  %v762_v28 = vmul.f32 %v730_v29, %v730_v29 }
 0x114   : > { %v846_v35 = vsel %vm179_vm4, %v822_v39, 0.0  ;;  %v1008_v9 = vsel %vm422_vm2, %v988_v4, %v3783_v3  ;;  %v1559_v29 = vmul.f32 0.5, %v1389_v24  ;;  %v1391_v11 = vmul.f32 %v1876_v26, %v3172_v40 }
 0x115   : > { %v1306_v22 = vmul.f32 0.33333334, %v1290_v36  ;;  %v870_v34 = vpop.permute.xlu0 %869  ;;  %v672_v44 = vpop.permute.xlu1 %671  ;;  %v1529_v8 = vadd.f32 %v1353_v61, %v777_v51  ;;  %v3869_v5 = vrot.slane %v3152_v56, 7  ;;  %v778_v47 = vadd.f32 %v762_v28, %v2857_v10 }
 0x116   : > { %v894_v14 = vsel %vm180_vm5, %v870_v34, 0.0  ;;  %v699_v16 = vsel %vm180_vm5, %v672_v44, 0.0  ;;  %v1036_v34 = vadd.f32 %v1008_v9, %v972_v43  ;;  %v1575_v3 = vsub.f32 %v1543_v50, %v1559_v29 }
 0x117   : > { %v1338_v39 = vmul.f32 %v1306_v22, %v1306_v22  ;;  %v3263_v36 = vsub.f32 %v846_v35, %v894_v14  ;;  %v715_v41 = vadd.f32 %v699_v16, %v2991_v27  ;;  %v944_v4 = vsel %vm357_vm0, %v3869_v5, %v3784_v32  ;;  %v3870_v22 = vld [vmem:[#allocation20_spill] sm:$0xff] }
 0x118   : > { %v1395_v44 = vand.u32 2147483648, %v3172_v40  ;;  %v1393_v27 = vsel %vm1392_vm8, %v3172_v40, %v1391_v11  ;;  %v1227_v14 = vadd.f32 %v1211_v18, %v3870_v22  ;;  %v1323_v16 = vmul.f32 %v1051_v6, %v1051_v6 }
 0x119   : > { %v1354_v26 = vadd.f32 %v1338_v39, %v1322_v42  ;;  %v731_v51 = vmul.f32 0.33333334, %v715_v41  ;;  %v1186_v61 = vpop.permute.xlu0 %1185  ;;  %v1248_v35 = vpop.permute.xlu1 %1247  ;;  %v3786_v56 = vrot.slane %v3263_v36, 1  ;;  %v3281_v50 = vadd.f32 0.0026143792, %v1529_v8 }
 0x11a   : > { %v1275_v5 = vsel %vm180_vm5, %v1248_v35, 0.0  ;;  %v973_v10 = vadd.f32 %v944_v4, %v3216_v53  ;;  %1879 = vrcp.f32 %v1575_v3  ;;  %v1052_v9 = vmul.f32 0.33333334, %v1036_v34 }
 0x11b   : > { %v3284_v42 = vmul.f32 %v1354_v26, %v778_v47  ;;  %v1878_v43 = vpop.eup %1877  ;;  %v1291_v28 = vadd.f32 %v1275_v5, %v1227_v14  ;;  %v1396_v29 = vsel %vm1394_vm9, %v1395_v44, %v1393_v27  ;;  %vm1399_vm10 = vcmp.eq.f32.partialorder %v3232_v23, inf }
 0x11c   : > { %v763_v6 = vmul.f32 %v731_v51, %v731_v51  ;;  %vm1401_vm11 = vcmp.eq.f32.partialorder %v3232_v23, 0.0  ;;  %v1402_v8 = vand.u32 2147483648, %v3232_v23  ;;  %v3871_v40 = vrot.slane %v3216_v53, 1 }
 0x11d   : > { %1881 = vrsqrt.f32 %v3284_v42  ;;  %v824_v18 = vpop.permute.xlu0 %823  ;;  %v872_v11 = vpop.permute.xlu1 %871  ;;  %v1307_v39 = vmul.f32 0.33333334, %v1291_v28  ;;  %v926_v34 = vrot.slane %v3263_v36, 7  ;;  %v1495_v44 = vmul.f32 1.5, %v1389_v24 }
 0x11e   : > { %v847_v3 = vsel %vm179_vm4, %v824_v18, 0.0  ;;  %v895_v41 = vsel %vm180_vm5, %v872_v11, 0.0  ;;  %v1007_v4 = vsel %vm422_vm2, %v3871_v40, %v3786_v56  ;;  %v1560_v51 = vmul.f32 0.5, %v1396_v29 }
 0x11f   : > { %v1398_v35 = vmul.f32 %v1878_v43, %v3232_v23  ;;  %v1530_v27 = vadd.f32 %v1354_v26, %v778_v47  ;;  %v1212_v22 = vsel %vm179_vm4, %v1186_v61, 0.0  ;;  %v1339_v14 = vmul.f32 %v1307_v39, %v1307_v39 }
 0x120   : > { %v1324_v5 = vmul.f32 %v1052_v9, %v1052_v9  ;;  %v779_v28 = vadd.f32 %v763_v6, %v2859_v20  ;;  %v3307_v18 = vsub.f32 %v847_v3, %v895_v41  ;;  %v1037_v21 = vadd.f32 %v1007_v4, %v973_v10 }
 0x121   : > { %v674_v11 = vpop.permute.xlu0 %673  ;;  %v1188_v32 = vpop.permute.xlu1 %1187  ;;  %v1576_v40 = vsub.f32 %v3228_v37, %v1560_v51  ;;  %v1355_v56 = vadd.f32 %v1339_v14, %v1323_v16  ;;  %v1496_v43 = vmul.f32 1.5, %v1396_v29  ;;  %v1400_v47 = vsel %vm1399_vm10, %v3232_v23, %v1398_v35  ;;  %v3873_v37 = vld [vmem:[#allocation21_spill] sm:$0xff] }
 0x122   : > { %v700_v24 = vsel %vm180_vm5, %v674_v11, 0.0  ;;  %v3872_v26 = vrot.slane %v3216_v53, 7  ;;  %v1511_v9 = vadd.f32 0.0026143792, %v1495_v44  ;;  %v3320_v10 = vadd.f32 0.0026143792, %v1530_v27 }
 0x123   : > { %v716_v61 = vadd.f32 %v700_v24, %v2994_v60  ;;  %1883 = vrcp.f32 %v1576_v40  ;;  %v1228_v16 = vadd.f32 %v1212_v22, %v3873_v37  ;;  %v3323_v6 = vmul.f32 %v1355_v56, %v779_v28 }
 0x124   : > { %v943_v20 = vsel %vm357_vm0, %v3872_v26, %v926_v34  ;;  %v1403_v29 = vsel %vm1401_vm11, %v1402_v8, %v1400_v47  ;;  %v1880_v39 = vpop.eup %1879  ;;  %v927_v3 = vrot.slane %v3307_v18, 7  ;;  %v991_v53 = vrot.slane %v3307_v18, 1 }
 0x125   : > { %v732_v41 = vmul.f32 0.33333334, %v716_v61  ;;  %v1250_v4 = vpop.permute.xlu0 %1249  ;;  %v826_v51 = vpop.permute.xlu1 %825  ;;  %v1561_v60 = vmul.f32 0.5, %v1403_v29  ;;  %v974_v44 = vadd.f32 %v943_v20, %v3263_v36  ;;  %v1053_v27 = vmul.f32 0.33333334, %v1037_v21 }
 0x126   : > { %v1276_v35 = vsel %vm180_vm5, %v1250_v4, 0.0  ;;  %v1512_v22 = vadd.f32 0.0026143792, %v1496_v43  ;;  %v1213_v23 = vsel %vm179_vm4, %v1188_v32, 0.0  ;;  %vm1406_vm12 = vcmp.eq.f32.partialorder %v3284_v42, inf }
 0x127   : > { %v1882_v14 = vpop.eup %1881  ;;  %v1292_v8 = vadd.f32 %v1276_v35, %v1228_v16  ;;  %vm1408_vm13 = vcmp.eq.f32.partialorder %v3284_v42, 0.0  ;;  %1885 = vrsqrt.f32 %v3323_v6  ;;  %v1607_v11 = vmul.f32 %v1880_v39, %v1511_v9 }
 0x128   : > { %v1577_v40 = vsub.f32 %v3281_v50, %v1561_v60  ;;  %v1405_v24 = vmul.f32 %v1882_v14, %v3284_v42  ;;  %v942_v21 = vsel %vm357_vm0, %v926_v34, %v927_v3  ;;  %v764_v43 = vmul.f32 %v732_v41, %v732_v41 }
 0x129   : > { %v1308_v47 = vmul.f32 0.33333334, %v1292_v8  ;;  %v874_v32 = vpop.permute.xlu0 %873  ;;  %v676_v26 = vpop.permute.xlu1 %675  ;;  %v3874_v20 = vrot.slane %v3263_v36, 1  ;;  %v1531_v9 = vadd.f32 %v1355_v56, %v779_v28  ;;  %v848_v16 = vsel %vm179_vm4, %v826_v51, 0.0 }
 0x12a   : > { %v896_v50 = vsel %vm180_vm5, %v874_v32, 0.0  ;;  %v701_v37 = vsel %vm180_vm5, %v676_v26, 0.0  ;;  %1887 = vrcp.f32 %v1577_v40  ;;  %v1497_v41 = vmul.f32 1.5, %v1403_v29  ;;  %v3875_v32 = vld [vmem:[#allocation22_spill] sm:$0xff] }
 0x12b   : > { %v1006_v61 = vsel %vm422_vm2, %v3874_v20, %v991_v53  ;;  %v1340_v34 = vmul.f32 %v1308_v47, %v1308_v47  ;;  %v717_v39 = vadd.f32 %v701_v37, %v3052_v25  ;;  %v1843_v4 = vadd.f32 -1.0, %v1607_v11 }
 0x12c   : > { %v1038_v36 = vadd.f32 %v1006_v61, %v974_v44  ;;  %v1407_v56 = vsel %vm1406_vm12, %v3284_v42, %v1405_v24  ;;  %v1409_v28 = vand.u32 2147483648, %v3284_v42  ;;  %v780_v35 = vadd.f32 %v764_v43, %v2888_v30 }
 0x12d   : > { %v1884_v60 = vpop.eup %1883  ;;  %v1356_v14 = vadd.f32 %v1340_v34, %v1324_v5  ;;  %v3361_v8 = vsub.f32 %v848_v16, %v896_v50  ;;  %v733_v40 = vmul.f32 0.33333334, %v717_v39  ;;  %v1190_v47 = vpop.permute.xlu0 %1189  ;;  %v1229_v25 = vadd.f32 %v1213_v23, %v3875_v32 }
 0x12e   : > { %v1252_v51 = vpop.permute.xlu1 %1251  ;;  %v1325_v29 = vmul.f32 %v1053_v27, %v1053_v27  ;;  %1639 = vadd.xlane.f32.xlu0 %v1843_v4  ;;  %v1608_v11 = vmul.f32 %v1884_v60, %v1512_v22  ;;  %v3366_v24 = vadd.f32 0.0026143792, %v1531_v9  ;;  %v975_v26 = vadd.f32 %v942_v21, %v3307_v18 }
 0x12f   : > { %v1277_v44 = vsel %vm180_vm5, %v1252_v51, 0.0  ;;  %v3369_v20 = vmul.f32 %v1356_v14, %v780_v35  ;;  %v1410_v30 = vsel %vm1408_vm13, %v1409_v28, %v1407_v56  ;;  %v1513_v43 = vadd.f32 0.0026143792, %v1497_v41 }
 0x130   : > { %v1293_v5 = vadd.f32 %v1277_v44, %v1229_v25  ;;  %v1692_v61 = vmul.f32 %v1843_v4, %v1843_v4  ;;  %v1054_v50 = vmul.f32 0.33333334, %v1038_v36  ;;  %v928_v27 = vrot.slane %v3361_v8, 7 }
 0x131   : > { %1889 = vrsqrt.f32 %v3369_v20  ;;  %v765_v23 = vmul.f32 %v733_v40, %v733_v40  ;;  %v828_v37 = vpop.permute.xlu0 %827  ;;  %v3375_v9 = vadd.f32 -1.0, %v1608_v11  ;;  %v1886_v34 = vpop.eup %1885  ;;  %v1562_v39 = vmul.f32 0.5, %v1410_v30 }
 0x132   : > { %v876_v22 = vpop.permute.xlu1 %875  ;;  %v1309_v21 = vmul.f32 0.33333334, %v1293_v5  ;;  %v849_v16 = vsel %vm179_vm4, %v828_v37, 0.0  ;;  %v992_v41 = vrot.slane %v3361_v8, 1  ;;  %v1214_v4 = vsel %vm179_vm4, %v1190_v47, 0.0 }
 0x133   : > { %v897_v42 = vsel %vm180_vm5, %v876_v22, 0.0  ;;  %vm1413_vm14 = vcmp.eq.f32.partialorder %v3323_v6, inf  ;;  %vm1415_vm15 = vcmp.eq.f32.partialorder %v3323_v6, 0.0  ;;  %v1532_v56 = vadd.f32 %v1356_v14, %v780_v35 }
 0x134   : > { %v1888_v36 = vpop.eup %1887  ;;  %v1341_v28 = vmul.f32 %v1309_v21, %v1309_v21  ;;  %v3386_v60 = vsub.f32 %v849_v16, %v897_v42  ;;  %1641 = vadd.xlane.f32.xlu1 %v3375_v9  ;;  %v1578_v40 = vsub.f32 %v3320_v10, %v1562_v39  ;;  %v941_v51 = vsel %vm357_vm0, %v927_v3, %v928_v27 }
 0x135   : > { %v781_v47 = vadd.f32 %v765_v23, %v2917_v57  ;;  %v1609_v32 = vmul.f32 %v1888_v36, %v1513_v43  ;;  %v678_v25 = vpop.permute.xlu0 %677  ;;  %v1412_v11 = vmul.f32 %v1886_v34, %v3323_v6  ;;  %v1498_v5 = vmul.f32 1.5, %v1410_v30  ;;  %v3876_v30 = vld [vmem:[#allocation23_spill] sm:$0xff] }
 0x136   : > { %v1192_v44 = vpop.permute.xlu1 %1191  ;;  %v1357_v35 = vadd.f32 %v1341_v28, %v1325_v29  ;;  %v702_v14 = vsel %vm180_vm5, %v678_v25, 0.0  ;;  %1891 = vrcp.f32 %v1578_v40  ;;  %v1326_v22 = vmul.f32 %v1054_v50, %v1054_v50 }
 0x137   : > { %v3398_v37 = vadd.f32 -1.0, %v1609_v32  ;;  %v718_v10 = vadd.f32 %v702_v14, %v3055_v33  ;;  %v1416_v3 = vand.u32 2147483648, %v3323_v6  ;;  %v976_v57 = vadd.f32 %v941_v51, %v3361_v8 }
 0x138   : > { %v3403_v43 = vmul.f32 %v1357_v35, %v781_v47  ;;  %v929_v23 = vrot.slane %v3386_v60, 7  ;;  %1708 = vadd.xlane.f32.xlu1 %v1692_v61  ;;  %v1005_v29 = vsel %vm422_vm2, %v991_v53, %v992_v41  ;;  %v1230_v34 = vadd.f32 %v1214_v4, %v3876_v30 }
 0x139   : > { %v993_v21 = vrot.slane %v3386_v60, 1  ;;  %1643 = vadd.xlane.f32.xlu0 %v3398_v37  ;;  %v734_v33 = vmul.f32 0.33333334, %v718_v10  ;;  %v1254_v50 = vpop.permute.xlu0 %1253  ;;  %v1414_v8 = vsel %vm1413_vm14, %v3323_v6, %v1412_v11  ;;  %v3416_v16 = vadd.f32 0.0026143792, %v1532_v56 }
 0x13a   : > { %1893 = vrsqrt.f32 %v3403_v43  ;;  %v1278_v18 = vsel %vm180_vm5, %v1254_v50, 0.0  ;;  %v830_v53 = vpop.permute.xlu1 %829  ;;  %v1514_v61 = vadd.f32 0.0026143792, %v1498_v5  ;;  %v1039_v4 = vadd.f32 %v1005_v29, %v975_v26 }
 0x13b   : > { %v1890_v42 = vpop.eup %1889  ;;  %v1294_v39 = vadd.f32 %v1278_v18, %v1230_v34  ;;  %v1417_v36 = vsel %vm1415_vm15, %v1416_v3, %v1414_v8  ;;  %vm1420_vm1 = vcmp.eq.f32.partialorder %v3369_v20, inf  ;;  %v940_v56 = vsel %vm357_vm0, %v928_v27, %v929_v23 }
 0x13c   : > { %v1215_v28 = vsel %vm179_vm4, %v1192_v44, 0.0  ;;  %v1563_v40 = vmul.f32 0.5, %v1417_v36  ;;  %v1419_v51 = vmul.f32 %v1890_v42, %v3369_v20  ;;  %v1533_v32 = vadd.f32 %v1357_v35, %v781_v47 }
 0x13d   : > { %v766_v25 = vmul.f32 %v734_v33, %v734_v33  ;;  %v1310_v11 = vmul.f32 0.33333334, %v1294_v39  ;;  %v878_v26 = vpop.permute.xlu0 %877  ;;  %v1004_v6 = vsel %vm422_vm2, %v992_v41, %v993_v21  ;;  %v850_v14 = vsel %vm179_vm4, %v830_v53, 0.0 }
 0x13e   : > { %v898_v27 = vsel %vm180_vm5, %v878_v26, 0.0  ;;  %v680_v5 = vpop.permute.xlu1 %679  ;;  %v1579_v44 = vsub.f32 %v3366_v24, %v1563_v40  ;;  %v1423_v10 = vand.u32 2147483648, %v3369_v20  ;;  %v1421_v3 = vsel %vm1420_vm1, %v3369_v20, %v1419_v51 }
 0x13f   : > { %v1342_v47 = vmul.f32 %v1310_v11, %v1310_v11  ;;  %v703_v35 = vsel %vm180_vm5, %v680_v5, 0.0  ;;  %vm1422_vm3 = vcmp.eq.f32.partialorder %v3369_v20, 0.0  ;;  %v1040_v30 = vadd.f32 %v1004_v6, %v976_v57  ;;  %v3877_v57 = vld [vmem:[#allocation25_spill] sm:$0xff] }
 0x140   : > { %v1892_v41 = vpop.eup %1891  ;;  %v719_v29 = vadd.f32 %v703_v35, %v3124_v31  ;;  %1895 = vrcp.f32 %v1579_v44  ;;  %v3448_v34 = vsel %vm1422_vm3, %v1423_v10, %v1421_v3  ;;  %v782_v24 = vadd.f32 %v766_v25, %v2987_v46 }
 0x141   : > { %v1358_v33 = vadd.f32 %v1342_v47, %v1326_v22  ;;  %v3451_v50 = vsub.f32 %v850_v14, %v898_v27  ;;  %v1610_v8 = vmul.f32 %v1892_v41, %v1514_v61  ;;  %v1194_v18 = vpop.permute.xlu0 %1193  ;;  %v1055_v42 = vmul.f32 0.33333334, %v1039_v4 }
 0x142   : > { %v735_v53 = vmul.f32 0.33333334, %v719_v29  ;;  %v1256_v39 = vpop.permute.xlu1 %1255  ;;  %v1693_v20 = vmul.f32 %v3375_v9, %v3375_v9  ;;  %v1564_v40 = vmul.f32 0.5, %v3448_v34  ;;  %v977_v31 = vadd.f32 %v940_v56, %v3386_v60 }
 0x143   : > { %v1231_v51 = vadd.f32 %v1215_v28, %v3877_v57  ;;  %v3458_v11 = vmul.f32 %v1358_v33, %v782_v24  ;;  %v1846_v46 = vadd.f32 -1.0, %v1610_v8  ;;  %v1279_v61 = vsel %vm180_vm5, %v1256_v39, 0.0 }
 0x144   : > { %v1894_v22 = vpop.eup %1893  ;;  %v1694_v4 = vmul.f32 %v3398_v37, %v3398_v37  ;;  %v1499_v25 = vmul.f32 1.5, %v1417_v36  ;;  %v1056_v26 = vmul.f32 0.33333334, %v1040_v30  ;;  %v3464_v6 = vadd.f32 0.0026143792, %v1533_v32 }
 0x145   : > { %1897 = vrsqrt.f32 %v3458_v11  ;;  %v994_v9 = vrot.slane %v3451_v50, 1  ;;  %1645 = vadd.xlane.f32.xlu0 %v1846_v46  ;;  %v1295_v56 = vadd.f32 %v1279_v61, %v1231_v51  ;;  %v832_v28 = vpop.permute.xlu0 %831  ;;  %v930_v14 = vrot.slane %v3451_v50, 7 }
 0x146   : > { %v767_v27 = vmul.f32 %v735_v53, %v735_v53  ;;  %v1327_v5 = vmul.f32 %v1055_v42, %v1055_v42  ;;  %v880_v44 = vpop.permute.xlu1 %879  ;;  %v1580_v10 = vsub.f32 %v3416_v16, %v1564_v40  ;;  %v851_v37 = vsel %vm179_vm4, %v832_v28, 0.0 }
 0x147   : > { %v1311_v47 = vmul.f32 0.33333334, %v1295_v56  ;;  %v899_v36 = vsel %vm180_vm5, %v880_v44, 0.0  ;;  %v1426_v32 = vmul.f32 %v1894_v22, %v3403_v43  ;;  %v1515_v35 = vadd.f32 0.0026143792, %v1499_v25 }
 0x148   : > { %v3475_v3 = vmul.f32 %v1056_v26, %v1056_v26  ;;  %1899 = vrcp.f32 %v1580_v10  ;;  %vm1427_vm6 = vcmp.eq.f32.partialorder %v3403_v43, inf  ;;  %v1216_v41 = vsel %vm179_vm4, %v1194_v18, 0.0 }
 0x149   : > { %v1343_v29 = vmul.f32 %v1311_v47, %v1311_v47  ;;  %1710 = vadd.xlane.f32.xlu0 %v1693_v20  ;;  %v620_v16 = vpop.permute.xlu0 %619  ;;  %v1003_v30 = vsel %vm422_vm2, %v993_v21, %v994_v9  ;;  %v1428_v8 = vsel %vm1427_vm6, %v3403_v43, %v1426_v32  ;;  %v939_v18 = vsel %vm357_vm0, %v929_v23, %v930_v14 }
 0x14a   : > { %v1896_v53 = vpop.eup %1895  ;;  %v3494_v42 = vadd.f32 %v767_v27, %v2996_v55  ;;  %v3496_v39 = vsub.f32 %v851_v37, %v899_v36  ;;  %v682_v20 = vpop.permute.xlu1 %681  ;;  %v1430_v40 = vand.u32 2147483648, %v3403_v43  ;;  %vm1429_vm7 = vcmp.eq.f32.partialorder %v3403_v43, 0.0  ;;  %v3878_v27 = vld [vmem:[#allocation28_spill] sm:$0xff] }
 0x14b   : > { %v1359_v57 = vadd.f32 %v1343_v29, %v1327_v5  ;;  %v1611_v21 = vmul.f32 %v1896_v53, %v1515_v35  ;;  %v704_v51 = vsel %vm180_vm5, %v682_v20, 0.0  ;;  %v1534_v22 = vadd.f32 %v1358_v33, %v782_v24 }
 0x14c   : > { %v720_v60 = vadd.f32 %v704_v51, %v3169_v15  ;;  %v1041_v61 = vadd.f32 %v1003_v30, %v977_v31  ;;  %v1431_v23 = vsel %vm1429_vm7, %v1430_v40, %v1428_v8  ;;  %v978_v55 = vadd.f32 %v939_v18, %v3451_v50 }
 0x14d   : > { %v3505_v25 = vmul.f32 %v1359_v57, %v3494_v42  ;;  %1712 = vadd.xlane.f32.xlu0 %v1694_v4  ;;  %v1847_v26 = vadd.f32 -1.0, %v1611_v21  ;;  %v1196_v56 = vpop.permute.xlu0 %1195  ;;  %v1500_v28 = vmul.f32 1.5, %v3448_v34  ;;  %v1232_v5 = vadd.f32 %v1216_v41, %v3878_v27 }
 0x14e   : > { %v641_v43 = vsel %vm179_vm4, %v620_v16, 0.0  ;;  %v736_v24 = vmul.f32 0.33333334, %v720_v60  ;;  %v1258_v33 = vpop.permute.xlu1 %1257  ;;  %v1565_v15 = vmul.f32 0.5, %v1431_v23  ;;  %v995_v44 = vrot.slane %v3496_v39, 1 }
 0x14f   : > { %v1898_v31 = vpop.eup %1897  ;;  %1901 = vrsqrt.f32 %v3505_v25  ;;  %1647 = vadd.xlane.f32.xlu1 %v1847_v26  ;;  %v1695_v10 = vmul.f32 %v1846_v46, %v1846_v46  ;;  %v1280_v4 = vsel %vm180_vm5, %v1258_v33, 0.0  ;;  %v3515_v47 = vadd.f32 0.0026143792, %v1534_v22 }
 0x150   : > { %v931_v34 = vrot.slane %v3496_v39, 7  ;;  %v1296_v37 = vadd.f32 %v1280_v4, %v1232_v5  ;;  %v1057_v36 = vmul.f32 0.33333334, %v1041_v61  ;;  %v657_v32 = vadd.f32 %v641_v43, %v2168_v59 }
 0x151   : > { %v768_v35 = vmul.f32 %v736_v24, %v736_v24  ;;  %1714 = vadd.xlane.f32.xlu0 %v1695_v10  ;;  %v834_v41 = vpop.permute.xlu0 %833  ;;  %v1516_v29 = vadd.f32 0.0026143792, %v1500_v28  ;;  %v1581_v16 = vsub.f32 %v3464_v6, %v1565_v15  ;;  %v1696_v46 = vmul.f32 %v1847_v26, %v1847_v26  ;;  %v3879_v10 = vld [vmem:[#allocation29_spill] sm:$0xff] }
 0x152   : > { %v1900_v30 = vpop.eup %1899  ;;  %v1312_v8 = vmul.f32 0.33333334, %v1296_v37  ;;  %v852_v53 = vsel %vm179_vm4, %v834_v41, 0.0  ;;  %v882_v18 = vpop.permute.xlu1 %881  ;;  %v1433_v20 = vmul.f32 %v1898_v31, %v3458_v11  ;;  %v1002_v59 = vsel %vm422_vm2, %v994_v9, %v995_v44 }
 0x153   : > { %v900_v40 = vsel %vm180_vm5, %v882_v18, 0.0  ;;  %v1612_v21 = vmul.f32 %v1900_v30, %v1516_v29  ;;  %1903 = vrcp.f32 %v1581_v16  ;;  %v938_v6 = vsel %vm357_vm0, %v930_v14, %v931_v34 }
 0x154   : > { %v1344_v51 = vmul.f32 %v1312_v8, %v1312_v8  ;;  %v3537_v22 = vsub.f32 %v852_v53, %v900_v40  ;;  %v3539_v60 = vmul.f32 %v1057_v36, %v1057_v36  ;;  %v1217_v61 = vsel %vm179_vm4, %v1196_v56, 0.0 }
 0x155   : > { %1716 = vadd.xlane.f32.xlu0 %v1696_v46  ;;  %v1848_v26 = vadd.f32 -1.0, %v1612_v21  ;;  %v622_v28 = vpop.permute.xlu0 %621  ;;  %v1501_v27 = vmul.f32 1.5, %v1431_v23  ;;  %vm1434_vm8 = vcmp.eq.f32.partialorder %v3458_v11, inf  ;;  %v784_v9 = vadd.f32 %v768_v35, %v3029_v2 }
 0x156   : > { %v1360_v50 = vadd.f32 %v1344_v51, %v3475_v3  ;;  %v684_v5 = vpop.permute.xlu1 %683  ;;  %v1042_v14 = vadd.f32 %v1002_v59, %v978_v55  ;;  %v1435_v43 = vsel %vm1434_vm8, %v3458_v11, %v1433_v20  ;;  %v1535_v24 = vadd.f32 %v1359_v57, %v3494_v42 }
 0x157   : > { %1649 = vadd.xlane.f32.xlu1 %v1848_v26  ;;  %v1697_v33 = vmul.f32 %v1848_v26, %v1848_v26  ;;  %v705_v56 = vsel %vm180_vm5, %v684_v5, 0.0  ;;  %v1437_v15 = vand.u32 2147483648, %v3458_v11  ;;  %v996_v31 = vrot.slane %v3537_v22, 1 }
 0x158   : > { %v3551_v23 = vmul.f32 %v1360_v50, %v784_v9  ;;  %v721_v2 = vadd.f32 %v705_v56, %v657_v32  ;;  %vm1436_vm9 = vcmp.eq.f32.partialorder %v3458_v11, 0.0  ;;  %v979_v55 = vadd.f32 %v938_v6, %v3496_v39 }
 0x159   : > { %v1902_v3 = vpop.eup %1901  ;;  %v1233_v4 = vadd.f32 %v1217_v61, %v3879_v10  ;;  %v932_v42 = vrot.slane %v3537_v22, 7  ;;  %1718 = vadd.xlane.f32.xlu0 %v1697_v33  ;;  %v1198_v57 = vpop.permute.xlu0 %1197  ;;  %v1438_v37 = vsel %vm1436_vm9, %v1437_v15, %v1435_v43  ;;  %v1517_v41 = vadd.f32 0.0026143792, %v1501_v27 }
 0x15a   : > { %1905 = vrsqrt.f32 %v3551_v23  ;;  %v737_v36 = vmul.f32 0.33333334, %v721_v2  ;;  %v1260_v35 = vpop.permute.xlu1 %1259  ;;  %v1058_v29 = vmul.f32 0.33333334, %v1042_v14  ;;  %v1566_v11 = vmul.f32 0.5, %v1438_v37 }
 0x15b   : > { %v1281_v32 = vsel %vm180_vm5, %v1260_v35, 0.0  ;;  %vm1441_vm10 = vcmp.eq.f32.partialorder %v3505_v25, inf  ;;  %vm1443_vm11 = vcmp.eq.f32.partialorder %v3505_v25, 0.0  ;;  %v642_v16 = vsel %vm179_vm4, %v622_v28, 0.0 }
 0x15c   : > { %v1297_v30 = vadd.f32 %v1281_v32, %v1233_v4  ;;  %v1001_v8 = vsel %vm422_vm2, %v995_v44, %v996_v31  ;;  %v1440_v46 = vmul.f32 %v1902_v3, %v3505_v25  ;;  %v1536_v18 = vadd.f32 %v1360_v50, %v784_v9 }
 0x15d   : > { %v1904_v53 = vpop.eup %1903  ;;  %v937_v20 = vsel %vm357_vm0, %v931_v34, %v932_v42  ;;  %v836_v40 = vpop.permute.xlu0 %835  ;;  %v1582_v21 = vsub.f32 %v3515_v47, %v1566_v11  ;;  %v1444_v59 = vand.u32 2147483648, %v3505_v25  ;;  %v769_v6 = vmul.f32 %v737_v36, %v737_v36 }
 0x15e   : > { %v1313_v51 = vmul.f32 0.33333334, %v1297_v30  ;;  %v1613_v61 = vmul.f32 %v1904_v53, %v1517_v41  ;;  %v853_v44 = vsel %vm179_vm4, %v836_v40, 0.0  ;;  %v884_v26 = vpop.permute.xlu1 %883  ;;  %v1043_v39 = vadd.f32 %v1001_v8, %v979_v55  ;;  %v3880_v41 = vld [vmem:[#allocation30_spill] sm:$0xff] }
 0x15f   : > { %v901_v28 = vsel %vm180_vm5, %v884_v26, 0.0  ;;  %1907 = vrcp.f32 %v1582_v21  ;;  %v1442_v34 = vsel %vm1441_vm10, %v3505_v25, %v1440_v46  ;;  %v1551_v5 = vadd.f32 0.0026143792, %v1535_v24 }
 0x160   : > { %v1345_v27 = vmul.f32 %v1313_v51, %v1313_v51  ;;  %v1849_v47 = vadd.f32 -1.0, %v1613_v61  ;;  %v3587_v9 = vsub.f32 %v853_v44, %v901_v28  ;;  %v1445_v50 = vsel %vm1443_vm11, %v1444_v59, %v1442_v34 }
 0x161   : > { %v658_v14 = vadd.f32 %v642_v16, %v3830_v7  ;;  %v1218_v43 = vsel %vm179_vm4, %v1198_v57, 0.0  ;;  %v624_v33 = vpop.permute.xlu0 %623  ;;  %v1567_v56 = vmul.f32 0.5, %v1445_v50  ;;  %v785_v15 = vadd.f32 %v769_v6, %v3032_v58 }
 0x162   : > { %v1361_v2 = vadd.f32 %v1345_v27, %v3539_v60  ;;  %1651 = vadd.xlane.f32.xlu1 %v1849_v47  ;;  %v1698_v3 = vmul.f32 %v1849_v47, %v1849_v47  ;;  %v686_v55 = vpop.permute.xlu1 %685  ;;  %v1502_v10 = vmul.f32 1.5, %v1438_v37  ;;  %v980_v4 = vadd.f32 %v937_v20, %v3537_v22 }
 0x163   : > { %v706_v25 = vsel %vm180_vm5, %v686_v55, 0.0  ;;  %v1330_v24 = vmul.f32 %v1058_v29, %v1058_v29  ;;  %v1583_v7 = vsub.f32 %v1551_v5, %v1567_v56  ;;  %v3599_v35 = vadd.f32 0.0026143792, %v1536_v18 }
 0x164   : > { %v1906_v36 = vpop.eup %1905  ;;  %v3601_v57 = vmul.f32 %v1361_v2, %v785_v15  ;;  %1720 = vadd.xlane.f32.xlu0 %v1698_v3  ;;  %v933_v58 = vrot.slane %v3587_v9, 7  ;;  %v1059_v60 = vmul.f32 0.33333334, %v1043_v39  ;;  %v1234_v32 = vadd.f32 %v1218_v43, %v3880_v41 }
 0x165   : > { %v997_v37 = vrot.slane %v3587_v9, 1  ;;  %v722_v11 = vadd.f32 %v706_v25, %v658_v14  ;;  %v1200_v16 = vpop.permute.xlu0 %1199  ;;  %1909 = vrcp.f32 %v1583_v7  ;;  %v643_v29 = vsel %vm179_vm4, %v624_v33, 0.0 }
 0x166   : > { %v1262_v30 = vpop.permute.xlu1 %1261  ;;  %v1518_v8 = vadd.f32 0.0026143792, %v1502_v10  ;;  %v1503_v46 = vmul.f32 1.5, %v1445_v50  ;;  %vm1448_vm12 = vcmp.eq.f32.partialorder %v3551_v23, inf  ;;  %1911 = vrsqrt.f32 %v3601_v57 }
 0x167   : > { %v738_v53 = vmul.f32 0.33333334, %v722_v11  ;;  %v1282_v18 = vsel %vm180_vm5, %v1262_v30, 0.0  ;;  %v1447_v20 = vmul.f32 %v1906_v36, %v3551_v23  ;;  %v936_v40 = vsel %vm357_vm0, %v932_v42, %v933_v58 }
 0x168   : > { %v1298_v21 = vadd.f32 %v1282_v18, %v1234_v32  ;;  %v3617_v59 = vmul.f32 %v1059_v60, %v1059_v60  ;;  %vm1450_vm13 = vcmp.eq.f32.partialorder %v3551_v23, 0.0  ;;  %v659_v51 = vadd.f32 %v643_v29, %v3844_v0 }
 0x169   : > { %v1908_v6 = vpop.eup %1907  ;;  %v626_v61 = vpop.permute.xlu0 %625  ;;  %v1000_v44 = vsel %vm422_vm2, %v996_v31, %v997_v37  ;;  %v1449_v26 = vsel %vm1448_vm12, %v3551_v23, %v1447_v20  ;;  %v1451_v28 = vand.u32 2147483648, %v3551_v23  ;;  %v770_v39 = vmul.f32 %v738_v53, %v738_v53 }
 0x16a   : > { %v1219_v42 = vsel %vm179_vm4, %v1200_v16, 0.0  ;;  %v1314_v34 = vmul.f32 0.33333334, %v1298_v21  ;;  %v1614_v27 = vmul.f32 %v1908_v6, %v1518_v8  ;;  %v688_v47 = vpop.permute.xlu1 %687  ;;  %v981_v50 = vadd.f32 %v936_v40, %v3587_v9 }
 0x16b   : > { %v707_v0 = vsel %vm180_vm5, %v688_v47, 0.0  ;;  %v1519_v22 = vadd.f32 0.0026143792, %v1503_v46  ;;  %v1452_v5 = vsel %vm1450_vm13, %v1451_v28, %v1449_v26  ;;  %v1044_v33 = vadd.f32 %v1000_v44, %v980_v4 }
 0x16c   : > { %v1346_v14 = vmul.f32 %v1314_v34, %v1314_v34  ;;  %v1850_v31 = vadd.f32 -1.0, %v1614_v27  ;;  %v723_v43 = vadd.f32 %v707_v0, %v659_v51  ;;  %v1537_v56 = vadd.f32 %v1361_v2, %v785_v15 }
 0x16d   : > { %v1235_v23 = vadd.f32 %v1219_v42, %v2580_v13  ;;  %v1202_v3 = vpop.permute.xlu0 %1201  ;;  %v1568_v55 = vmul.f32 0.5, %v1452_v5  ;;  %v3881_v10 = vrot.slane %v2908_v54, 1  ;;  %v786_v9 = vadd.f32 %v770_v39, %v3083_v63 }
 0x16e   : > { %v1362_v7 = vadd.f32 %v1346_v14, %v1330_v24  ;;  %1653 = vadd.xlane.f32.xlu1 %v1850_v31  ;;  %v1699_v36 = vmul.f32 %v1850_v31, %v1850_v31  ;;  %v739_v60 = vmul.f32 0.33333334, %v723_v43  ;;  %v1264_v41 = vpop.permute.xlu1 %1263  ;;  %v644_v15 = vsel %vm179_vm4, %v626_v61, 0.0 }
 0x16f   : > { %v999_v25 = vsel %vm422_vm2, %v997_v37, %v3881_v10  ;;  %v1910_v32 = vpop.eup %1909  ;;  %v1283_v13 = vsel %vm180_vm5, %v1264_v41, 0.0  ;;  %v1584_v2 = vsub.f32 %v3599_v35, %v1568_v55  ;;  %v3882_v4 = vrot.slane %v2908_v54, 7 }
 0x170   : > { %v3647_v63 = vmul.f32 %v1362_v7, %v786_v9  ;;  %1722 = vadd.xlane.f32.xlu0 %v1699_v36  ;;  %v1299_v24 = vadd.f32 %v1283_v13, %v1235_v23  ;;  %v1060_v11 = vmul.f32 0.33333334, %v1044_v33  ;;  %v1045_v16 = vadd.f32 %v999_v25, %v981_v50  ;;  %v1912_v29 = vpop.eup %1911 }
 0x171   : > { %v935_v37 = vsel %vm357_vm0, %v933_v58, %v3882_v4  ;;  %v771_v30 = vmul.f32 %v739_v60, %v739_v60  ;;  %v1220_v8 = vsel %vm179_vm4, %v1202_v3, 0.0  ;;  %v1615_v46 = vmul.f32 %v1910_v32, %v1519_v22  ;;  %v628_v53 = vpop.permute.xlu0 %627 }
 0x172   : > { %1913 = vrcp.f32 %v1584_v2  ;;  %v660_v35 = vadd.f32 %v644_v15, %v3855_v62  ;;  %v1315_v17 = vmul.f32 0.33333334, %v1299_v24  ;;  %v690_v58 = vpop.permute.xlu1 %689  ;;  %v982_v18 = vadd.f32 %v935_v37, %v2908_v54 }
 0x173   : > { %1915 = vrsqrt.f32 %v3647_v63  ;;  %v1851_v20 = vadd.f32 -1.0, %v1615_v46  ;;  %v708_v40 = vsel %vm180_vm5, %v690_v58, 0.0  ;;  %v1504_v21 = vmul.f32 1.5, %v1452_v5 }
 0x174   : > { %vm1455_vm0 = vcmp.eq.f32.partialorder %v3601_v57, inf  ;;  %v1236_v6 = vadd.f32 %v1220_v8, %v2582_v52  ;;  %v1347_v51 = vmul.f32 %v1315_v17, %v1315_v17  ;;  %v724_v61 = vadd.f32 %v708_v40, %v660_v35 }
 0x175   : > { %v1454_v44 = vmul.f32 %v1912_v29, %v3601_v57  ;;  %v3660_v26 = vadd.f32 %v771_v30, %v3102_v12  ;;  %1655 = vadd.xlane.f32.xlu1 %v1851_v20  ;;  %v645_v54 = vsel %vm179_vm4, %v628_v53, 0.0  ;;  %v1700_v62 = vmul.f32 %v1851_v20, %v1851_v20  ;;  %v1204_v28 = vpop.permute.xlu0 %1203 }
 0x176   : > { %v1458_v39 = vand.u32 2147483648, %v3601_v57  ;;  %v3666_v42 = vadd.f32 %v1347_v51, %v3617_v59  ;;  %v740_v34 = vmul.f32 0.33333334, %v724_v61  ;;  %v1266_v52 = vpop.permute.xlu1 %1265  ;;  %vm1457_vm2 = vcmp.eq.f32.partialorder %v3601_v57, 0.0 }
 0x177   : > { %v1456_v27 = vsel %vm1455_vm0, %v3601_v57, %v1454_v44  ;;  %1724 = vadd.xlane.f32.xlu0 %v1700_v62  ;;  %v1284_v12 = vsel %vm180_vm5, %v1266_v52, 0.0  ;;  %v1061_v47 = vmul.f32 0.33333334, %v1045_v16  ;;  %v1046_v50 = vadd.f32 %v3223_v49, %v982_v18 }
 0x178   : > { %v1459_v0 = vsel %vm1457_vm2, %v1458_v39, %v1456_v27  ;;  %v1553_v22 = vadd.f32 0.0026143792, %v1537_v56  ;;  %v3675_v5 = vmul.f32 %v3666_v42, %v3660_v26  ;;  %v1332_v59 = vmul.f32 %v1060_v11, %v1060_v11 }
 0x179   : > { %v1300_v14 = vadd.f32 %v1284_v12, %v1236_v6  ;;  %v1538_v31 = vadd.f32 %v1362_v7, %v786_v9  ;;  %v661_v43 = vadd.f32 %v645_v54, %v3858_v38  ;;  %v630_v33 = vpop.permute.xlu0 %629  ;;  %v1520_v57 = vadd.f32 0.0026143792, %v1504_v21  ;;  %v3883_v21 = vld [vmem:[#allocation31_spill] sm:$0xff] }
 0x17a   : > { %v1569_v23 = vmul.f32 0.5, %v1459_v0  ;;  %1917 = vrsqrt.f32 %v3675_v5  ;;  %v772_v3 = vmul.f32 %v740_v34, %v740_v34  ;;  %v1221_v49 = vsel %vm179_vm4, %v1204_v28, 0.0  ;;  %v692_v56 = vpop.permute.xlu1 %691 }
 0x17b   : > { %v1316_v55 = vmul.f32 0.33333334, %v1300_v14  ;;  %v709_v25 = vsel %vm180_vm5, %v692_v56, 0.0  ;;  %v1333_v36 = vmul.f32 %v1061_v47, %v1061_v47  ;;  %v1062_v60 = vmul.f32 0.33333334, %v1046_v50  ;;  %v3884_v14 = vld [vmem:[#allocation27_spill] sm:$0xff] }
 0x17c   : > { %v1914_v10 = vpop.eup %1913  ;;  %v1585_v9 = vsub.f32 %v1553_v22, %v1569_v23  ;;  %v725_v41 = vadd.f32 %v709_v25, %v661_v43  ;;  %vm1462_vm14 = vcmp.eq.f32.partialorder %v3647_v63, inf  ;;  %v1237_v15 = vadd.f32 %v1221_v49, %v2590_v19  ;;  %v3885_v49 = vld [vmem:[#allocation24_spill] sm:$0xff] }
 0x17d   : > { %v1916_v7 = vpop.eup %1915  ;;  %v1348_v38 = vmul.f32 %v1316_v55, %v1316_v55  ;;  %v1616_v32 = vmul.f32 %v1914_v10, %v1520_v57  ;;  %v1206_v13 = vpop.permute.xlu0 %1205  ;;  %v1465_v4 = vand.u32 2147483648, %v3647_v63  ;;  %v3688_v37 = vadd.f32 %v772_v3, %v3179_v48 }
 0x17e   : > { %1919 = vrcp.f32 %v1585_v9  ;;  %v1461_v2 = vmul.f32 %v1916_v7, %v3647_v63  ;;  %v646_v11 = vsel %vm179_vm4, %v630_v33, 0.0  ;;  %v1268_v29 = vpop.permute.xlu1 %1267  ;;  %v741_v30 = vmul.f32 0.33333334, %v725_v41 }
 0x17f   : > { %v3690_v24 = vadd.f32 %v1348_v38, %v1332_v59  ;;  %v1852_v16 = vadd.f32 -1.0, %v1616_v32  ;;  %v1222_v19 = vsel %vm179_vm4, %v1206_v13, 0.0  ;;  %v1285_v8 = vsel %vm180_vm5, %v1268_v29, 0.0 }
 0x180   : > { %v1463_v46 = vsel %vm1462_vm14, %v3647_v63, %v1461_v2  ;;  %v1505_v35 = vmul.f32 1.5, %v1459_v0  ;;  %vm1464_vm15 = vcmp.eq.f32.partialorder %v3647_v63, 0.0  ;;  %v1554_v17 = vadd.f32 0.0026143792, %v1538_v31 }
 0x181   : > { %v3701_v48 = vmul.f32 %v3690_v24, %v3688_v37  ;;  %1657 = vadd.xlane.f32.xlu1 %v1852_v16  ;;  %v1701_v53 = vmul.f32 %v1852_v16, %v1852_v16  ;;  %v662_v58 = vadd.f32 %v646_v11, %v3861_v45  ;;  %v1301_v18 = vadd.f32 %v1285_v8, %v1237_v15  ;;  %v694_v20 = vpop.permute.xlu0 %693 }
 0x182   : > { %v1466_v40 = vsel %vm1464_vm15, %v1465_v4, %v1463_v46  ;;  %v1238_v6 = vadd.f32 %v1222_v19, %v3883_v21  ;;  %v710_v51 = vsel %vm180_vm5, %v694_v20, 0.0  ;;  %v1334_v61 = vmul.f32 %v1062_v60, %v1062_v60  ;;  %v1270_v44 = vpop.permute.xlu1 %1269 }
 0x183   : > { %1921 = vrsqrt.f32 %v3701_v48  ;;  %1726 = vadd.xlane.f32.xlu0 %v1701_v53  ;;  %v773_v54 = vmul.f32 %v741_v30, %v741_v30  ;;  %v1317_v62 = vmul.f32 0.33333334, %v1301_v18  ;;  %v726_v28 = vadd.f32 %v710_v51, %v662_v58 }
 0x184   : > { %v1286_v63 = vsel %vm180_vm5, %v1270_v44, 0.0  ;;  %v1918_v45 = vpop.eup %1917  ;;  %v1539_v39 = vadd.f32 %v3666_v42, %v3660_v26  ;;  %v1521_v52 = vadd.f32 0.0026143792, %v1505_v35  ;;  %v1570_v27 = vmul.f32 0.5, %v1466_v40 }
 0x185   : > { %v1302_v34 = vadd.f32 %v1286_v63, %v1238_v6  ;;  %v1349_v12 = vmul.f32 %v1317_v62, %v1317_v62  ;;  %v742_v47 = vmul.f32 0.33333334, %v726_v28  ;;  %v1468_v50 = vmul.f32 %v1918_v45, %v3675_v5 }
 0x186   : > { %vm1469_vm4 = vcmp.eq.f32.partialorder %v3675_v5, inf  ;;  %v1586_v22 = vsub.f32 %v1554_v17, %v1570_v27  ;;  %vm1471_vm1 = vcmp.eq.f32.partialorder %v3675_v5, 0.0  ;;  %v1472_v1 = vand.u32 2147483648, %v3675_v5 }
 0x187   : > { %v1318_v0 = vmul.f32 0.33333334, %v1302_v34  ;;  %v789_v31 = vadd.f32 %v773_v54, %v3884_v14  ;;  %v1365_v43 = vadd.f32 %v1349_v12, %v1333_v36  ;;  %v774_v26 = vmul.f32 %v742_v47, %v742_v47 }
 0x188   : > { %v1920_v59 = vpop.eup %1919  ;;  %v1470_v42 = vsel %vm1469_vm4, %v3675_v5, %v1468_v50  ;;  %1923 = vrcp.f32 %v1586_v22  ;;  %v1555_v56 = vadd.f32 0.0026143792, %v1539_v39  ;;  %v1540_v5 = vadd.f32 %v3690_v24, %v3688_v37 }
 0x189   : > { %v1350_v33 = vmul.f32 %v1318_v0, %v1318_v0  ;;  %v1617_v57 = vmul.f32 %v1920_v59, %v1521_v52  ;;  %v1473_v23 = vsel %vm1471_vm1, %v1472_v1, %v1470_v42  ;;  %v1381_v3 = vmul.f32 %v1365_v43, %v789_v31 }
 0x18a   : > { %v790_v55 = vadd.f32 %v774_v26, %v3885_v49  ;;  %v1571_v60 = vmul.f32 0.5, %v1473_v23  ;;  %v1506_v32 = vmul.f32 1.5, %v1466_v40  ;;  %vm1476_vm5 = vcmp.eq.f32.partialorder %v3701_v48, inf }
 0x18b   : > { %v1366_v10 = vadd.f32 %v1350_v33, %v1334_v61  ;;  %v1853_v25 = vadd.f32 -1.0, %v1617_v57  ;;  %1925 = vrsqrt.f32 %v1381_v3  ;;  %v1479_v13 = vand.u32 2147483648, %v3701_v48 }
 0x18c   : > { %v1587_v41 = vsub.f32 %v1555_v56, %v1571_v60  ;;  %vm1478_vm3 = vcmp.eq.f32.partialorder %v3701_v48, 0.0  ;;  %v1556_v11 = vadd.f32 0.0026143792, %v1540_v5  ;;  %v1522_v16 = vadd.f32 0.0026143792, %v1506_v32 }
 0x18d   : > { %v1922_v9 = vpop.eup %1921  ;;  %v1382_v7 = vmul.f32 %v1366_v10, %v790_v55  ;;  %v1542_v38 = vadd.f32 %v1366_v10, %v790_v55  ;;  %1659 = vadd.xlane.f32.xlu1 %v1853_v25  ;;  %v1702_v36 = vmul.f32 %v1853_v25, %v1853_v25  ;;  %v1507_v19 = vmul.f32 1.5, %v1473_v23 }
 0x18e   : > { %v1475_v15 = vmul.f32 %v1922_v9, %v3701_v48  ;;  %v1541_v46 = vadd.f32 %v1365_v43, %v789_v31  ;;  %vm1483_vm6 = vcmp.eq.f32.partialorder %v1381_v3, inf  ;;  %v1486_v58 = vand.u32 2147483648, %v1381_v3 }
 0x18f   : > { %1927 = vrsqrt.f32 %v1382_v7  ;;  %1728 = vadd.xlane.f32.xlu0 %v1702_v36  ;;  %v1523_v20 = vadd.f32 0.0026143792, %v1507_v19  ;;  %vm1485_vm7 = vcmp.eq.f32.partialorder %v1381_v3, 0.0  ;;  %vm1490_vm8 = vcmp.eq.f32.partialorder %v1382_v7, inf }
 0x190   : > { %1929 = vrcp.f32 %v1587_v41  ;;  %v1477_v2 = vsel %vm1476_vm5, %v3701_v48, %v1475_v15  ;;  %v1557_v21 = vadd.f32 0.0026143792, %v1541_v46  ;;  %v1493_v62 = vand.u32 2147483648, %v1382_v7 }
 0x191   : > { %v1480_v4 = vsel %vm1478_vm3, %v1479_v13, %v1477_v2  ;;  %vm1492_vm9 = vcmp.eq.f32.partialorder %v1382_v7, 0.0  ;;  %v1558_v34 = vadd.f32 0.0026143792, %v1542_v38  ;;  %vm1773_vm10 = vcmask 0  }
 0x192   : > { %v1572_v29 = vmul.f32 0.5, %v1480_v4  ;;  %v1924_v30 = vpop.eup %1923  ;;  %v1508_v44 = vmul.f32 1.5, %v1480_v4 }
 0x193   : > { %v1618_v37 = vmul.f32 %v1924_v30, %v1522_v16 }
 0x194   : > { %v1588_v24 = vsub.f32 %v1556_v11, %v1572_v29  ;;  %v1524_v12 = vadd.f32 0.0026143792, %v1508_v44 }
 0x195   : > { %v1926_v8 = vpop.eup %1925  ;;  %v1854_v53 = vadd.f32 -1.0, %v1618_v37 }
 0x196   : > { %1931 = vrcp.f32 %v1588_v24  ;;  %v1482_v35 = vmul.f32 %v1926_v8, %v1381_v3 }
 0x197   : > { %1661 = vadd.xlane.f32.xlu1 %v1854_v53  ;;  %v1703_v17 = vmul.f32 %v1854_v53, %v1854_v53 }
 0x198   : > { %v1484_v48 = vsel %vm1483_vm6, %v1381_v3, %v1482_v35 }
 0x199   : > { %v1928_v18 = vpop.eup %1927  ;;  %1730 = vadd.xlane.f32.xlu0 %v1703_v17  ;;  %v1487_v6 = vsel %vm1485_vm7, %v1486_v58, %v1484_v48 }
 0x19a   : > { %v1930_v40 = vpop.eup %1929  ;;  %v1489_v51 = vmul.f32 %v1928_v18, %v1382_v7  ;;  %v1573_v54 = vmul.f32 0.5, %v1487_v6  ;;  %v1509_v1 = vmul.f32 1.5, %v1487_v6 }
 0x19b   : > { %v1619_v61 = vmul.f32 %v1930_v40, %v1523_v20 }
 0x19c   : > { %v1491_v28 = vsel %vm1490_vm8, %v1382_v7, %v1489_v51  ;;  %v1589_v45 = vsub.f32 %v1557_v21, %v1573_v54  ;;  %v1525_v31 = vadd.f32 0.0026143792, %v1509_v1 }
 0x19d   : > { %v1855_v63 = vadd.f32 -1.0, %v1619_v61  ;;  %v1494_v39 = vsel %vm1492_vm9, %v1493_v62, %v1491_v28 }
 0x19e   : > { %v1574_v52 = vmul.f32 0.5, %v1494_v39  ;;  %1933 = vrcp.f32 %v1589_v45  ;;  %v1510_v14 = vmul.f32 1.5, %v1494_v39 }
 0x19f   : > { %1663 = vadd.xlane.f32.xlu1 %v1855_v63  ;;  %v1704_v27 = vmul.f32 %v1855_v63, %v1855_v63 }
 0x1a0   : > { %v1932_v47 = vpop.eup %1931  ;;  %v1590_v50 = vsub.f32 %v1558_v34, %v1574_v52  ;;  %v1526_v42 = vadd.f32 0.0026143792, %v1510_v14 }
 0x1a1   : > { %1732 = vadd.xlane.f32.xlu0 %v1704_v27  ;;  %v1620_v0 = vmul.f32 %v1932_v47, %v1524_v12 }
 0x1a2   : > { %1935 = vrcp.f32 %v1590_v50 }
 0x1a3   : > { %v1856_v22 = vadd.f32 -1.0, %v1620_v0 }
 0x1a5   : > { %1665 = vadd.xlane.f32.xlu1 %v1856_v22  ;;  %v1705_v59 = vmul.f32 %v1856_v22, %v1856_v22 }
 0x1a7   : > { %1734 = vadd.xlane.f32.xlu0 %v1705_v59 }
 0x1a8   : > { %v1934_v43 = vpop.eup %1933 }
 0x1a9   : > { %v1621_v26 = vmul.f32 %v1934_v43, %v1525_v31 }
 0x1ab   : > { %v1857_v57 = vadd.f32 -1.0, %v1621_v26 }
 0x1ac   : > { %v1936_v33 = vpop.eup %1935 }
 0x1ad   : > { %v1622_v23 = vmul.f32 %v1936_v33, %v1526_v42  ;;  %1667 = vadd.xlane.f32.xlu1 %v1857_v57  ;;  %v1706_v55 = vmul.f32 %v1857_v57, %v1857_v57 }
 0x1af   : > { %v1858_v3 = vadd.f32 -1.0, %v1622_v23 }
 0x1b1   : > { %v1707_v49 = vmul.f32 %v1858_v3, %v1858_v3  ;;  %1669 = vadd.xlane.f32.xlu1 %v1858_v3 }
 0x1b3   : > { %1738 = vadd.xlane.f32.xlu0 %v1707_v49 }
 0x1b5   : > { %1736 = vadd.xlane.f32.xlu1 %v1706_v55 }
 0x1bb   : > { %v1640_v56 = vpop.xlane.xlu0 %1639 }
 0x1c1   : > { %v1642_v60 = vpop.xlane.xlu1 %1641 }
 0x1c2   : > { %v1671_v4 = vadd.f32 %v1642_v60, %v1640_v56 }
 0x1c5   : > { %v1709_v7 = vpop.xlane.xlu1 %1708 }
 0x1c6   : > { %v1644_v10 = vpop.xlane.xlu0 %1643 }
 0x1c7   : > { %v1672_v29 = vadd.f32 %v1671_v4, %v1644_v10 }
 0x1d2   : > { %v1646_v25 = vpop.xlane.xlu0 %1645 }
 0x1d3   : > { %v1673_v24 = vadd.f32 %v1672_v29, %v1646_v25 }
 0x1d6   : > { %v1711_v9 = vpop.xlane.xlu0 %1710 }
 0x1d7   : > { %v1740_v19 = vadd.f32 %v1711_v9, %v1709_v7 }
 0x1da   : > { %v1713_v38 = vpop.xlane.xlu0 %1712 }
 0x1db   : > { %v1741_v35 = vadd.f32 %v1740_v19, %v1713_v38 }
 0x1dc   : > { %v1648_v36 = vpop.xlane.xlu1 %1647 }
 0x1dd   : > { %v1674_v8 = vadd.f32 %v1673_v24, %v1648_v36 }
 0x1de   : > { %v1715_v41 = vpop.xlane.xlu0 %1714 }
 0x1df   : > { %v1742_v58 = vadd.f32 %v1741_v35, %v1715_v41 }
 0x1e2   : > { %v1717_v32 = vpop.xlane.xlu0 %1716 }
 0x1e3   : > { %v1743_v40 = vadd.f32 %v1742_v58, %v1717_v32 }
 0x1e4   : > { %v1650_v5 = vpop.xlane.xlu1 %1649 }
 0x1e5   : > { %v1675_v17 = vadd.f32 %v1674_v8, %v1650_v5 }
 0x1e6   : > { %v1719_v13 = vpop.xlane.xlu0 %1718 }
 0x1e7   : > { %v1744_v6 = vadd.f32 %v1743_v40, %v1719_v13 }
 0x1ef   : > { %v1652_v15 = vpop.xlane.xlu1 %1651 }
 0x1f0   : > { %v1676_v18 = vadd.f32 %v1675_v17, %v1652_v15 }
 0x1f1   : > { %v1721_v11 = vpop.xlane.xlu0 %1720 }
 0x1f2   : > { %v1745_v54 = vadd.f32 %v1744_v6, %v1721_v11 }
 0x1fb   : > { %v1654_v2 = vpop.xlane.xlu1 %1653 }
 0x1fc   : > { %v1677_v21 = vadd.f32 %v1676_v18, %v1654_v2 }
 0x1fd   : > { %v1723_v30 = vpop.xlane.xlu0 %1722 }
 0x1fe   : > { %v1746_v28 = vadd.f32 %v1745_v54, %v1723_v30 }
 0x202   : > { %v1656_v16 = vpop.xlane.xlu1 %1655 }
 0x203   : > { %v1678_v51 = vadd.f32 %v1677_v21, %v1656_v16 }
 0x204   : > { %v1725_v46 = vpop.xlane.xlu0 %1724 }
 0x205   : > { %v1747_v34 = vadd.f32 %v1746_v28, %v1725_v46 }
 0x20e   : > { %v1658_v37 = vpop.xlane.xlu1 %1657 }
 0x20f   : > { %v1679_v62 = vadd.f32 %v1678_v51, %v1658_v37 }
 0x210   : > { %v1727_v20 = vpop.xlane.xlu0 %1726 }
 0x211   : > { %v1748_v27 = vadd.f32 %v1747_v34, %v1727_v20 }
 0x21a   : > { %v1660_v53 = vpop.xlane.xlu1 %1659 }
 0x21b   : > { %v1680_v63 = vadd.f32 %v1679_v62, %v1660_v53 }
 0x21c   : > { %v1729_v61 = vpop.xlane.xlu0 %1728 }
 0x21d   : > { %v1749_v0 = vadd.f32 %v1748_v27, %v1729_v61 }
 0x224   : > { %v1662_v48 = vpop.xlane.xlu1 %1661 }
 0x225   : > { %v1681_v52 = vadd.f32 %v1680_v63, %v1662_v48 }
 0x226   : > { %v1731_v45 = vpop.xlane.xlu0 %1730 }
 0x227   : > { %v1750_v1 = vadd.f32 %v1749_v0, %v1731_v45 }
 0x22c   : > { %v1664_v44 = vpop.xlane.xlu1 %1663 }
 0x22d   : > { %v1682_v12 = vadd.f32 %v1681_v52, %v1664_v44 }
 0x22e   : > { %v1733_v47 = vpop.xlane.xlu0 %1732 }
 0x22f   : > { %v1751_v43 = vadd.f32 %v1750_v1, %v1733_v47 }
 0x232   : > { %v1666_v39 = vpop.xlane.xlu1 %1665 }
 0x233   : > { %v1683_v22 = vadd.f32 %v1682_v12, %v1666_v39 }
 0x234   : > { %v1735_v14 = vpop.xlane.xlu0 %1734 }
 0x235   : > { %v1752_v42 = vadd.f32 %v1751_v43, %v1735_v14 }
 0x23a   : > { %v1668_v50 = vpop.xlane.xlu1 %1667 }
 0x23b   : > { %v1684_v59 = vadd.f32 %v1683_v22, %v1668_v50 }
 0x23e   : > { %v1670_v31 = vpop.xlane.xlu1 %1669 }
 0x23f   : > { %v1685_v26 = vadd.f32 %v1684_v59, %v1670_v31 }
 0x240   : > { %v1739_v49 = vpop.xlane.xlu0 %1738 }
 0x241   : > { %v1686_v33 = vrot.slane %v1685_v26, 4 }
 0x242   : > { %v1737_v57 = vpop.xlane.xlu1 %1736 }
 0x243   : > { %v1687_v23 = vadd.f32 %v1686_v33, %v1685_v26  ;;  %v1753_v3 = vadd.f32 %v1752_v42, %v1737_v57 }
 0x245   : > { %v1688_v55 = vrot.slane %v1687_v23, 2  ;;  %v1754_v56 = vadd.f32 %v1753_v3, %v1739_v49 }
 0x247   : > { %v1689_v10 = vadd.f32 %v1688_v55, %v1687_v23  ;;  %v1755_v25 = vrot.slane %v1754_v56, 4 }
 0x249   : > { %v1690_v60 = vrot.slane %v1689_v10, 1  ;;  %v1756_v9 = vadd.f32 %v1755_v25, %v1754_v56 }
 0x24b   : > { %v1691_v7 = vadd.f32 %v1690_v60, %v1689_v10  ;;  %v1757_v38 = vrot.slane %v1756_v9, 2 }
 0x24d   : > { %v1761_v36 = vmul.f32 %v1691_v7, %v1691_v7  ;;  %v1758_v41 = vadd.f32 %v1757_v38, %v1756_v9 }
 0x24f   : > { %v1759_v5 = vrot.slane %v1758_v41, 1  ;;  %v1762_v32 = vmul.f32 6.1035156e-05, %v1761_v36 }
 0x251   : > { %v1760_v15 = vadd.f32 %v1759_v5, %v1758_v41 }
 0x253   : > { %v1763_v13 = vsub.f32 %v1760_v15, %v1762_v32 }
 0x255   : > { %v1764_v2 = vmul.f32 6.103888e-05, %v1763_v13 }
 0x257   : > { %v1765_v4 = vmax.f32 %v1764_v2, 0.0 }
 0x259   : > { %1937 = vrsqrt.f32 %v1765_v4  ;;  %vm1768_vm11 = vcmp.eq.f32.partialorder %v1765_v4, inf  ;;  %v1771_v29 = vand.u32 2147483648, %v1765_v4  ;;  %vm1770_vm12 = vcmp.eq.f32.partialorder %v1765_v4, 0.0 }
 0x263   : > { %v1938_v11 = vpop.eup %1937 }
 0x264   : > { %v1767_v16 = vmul.f32 %v1938_v11, %v1765_v4 }
 0x266   : > { %v1769_v30 = vsel %vm1768_vm11, %v1765_v4, %v1767_v16 }
 0x267   : > { %v1772_v37 = vsel %vm1770_vm12, %v1771_v29, %v1769_v30 }
 0x268   : > { %1774 = vst.msk [vmem:[%s159_s22] sm:$0x1] %vm1773_vm10, %v1772_v37 }
 0x269 PF: > { %s12_s9 = sadd.s32 1, %s1945_s9  }
 0x26a   : > { %p9_p4 = scmp.ge.s32.totalorder %s12_s9, 4  }
 0x26c   :  { %11 = sbr.rel (!%p9_p4) target bundleno = 1 (0x1), region = 61 }

</bundles_post_ra>
